<compile_context>
chip_gen: v5e
topology: v5e:2x2
jax: 0.10.0
libtpu: 0.0.40
codegen_flags: <defaults>
</compile_context>

<pallas_src>
import numpy as np
import jax
import jax.numpy as jnp
from jax.experimental import pallas as pl
from jax.experimental.pallas import tpu as pltpu

PYRAMIDS = (0.5, 0.75)


# ---------------------------------------------------------------------------
# Trace-time interp-matrix helpers (PyTorch bilinear, align_corners=False)
# ---------------------------------------------------------------------------

def _interp_matrix(out_size, in_size):
    scale = in_size / out_size
    dst = np.arange(out_size, dtype=np.float64)
    src = np.maximum((dst + 0.5) * scale - 0.5, 0.0)
    i0 = np.minimum(np.floor(src).astype(np.int64), in_size - 1)
    i1 = np.minimum(i0 + 1, in_size - 1)
    lam = (src - i0).astype(np.float32)
    A = np.zeros((out_size, in_size), dtype=np.float32)
    A[np.arange(out_size), i0] += (1.0 - lam)
    A[np.arange(out_size), i1] += lam
    return A


# ---------------------------------------------------------------------------
# Kernels
# ---------------------------------------------------------------------------

def _scale_fused_kernel(x_ref, m_ref, w_ref, b_ref, h0_ref, h1_ref, ps_ref):
    """Both 1x1 convs of (x*mask) + a per-tile MSE partial sum.

    Blocks: x (1,Cin,T) bf16, m (1,1,T) bf16, w (2C,Cin) bf16 resident,
            b (2C,1) f32 resident, h0/h1 (1,Cout,T) f32, ps (1,8,128) f32.
    Cin is tiny -> channel contraction as VPU broadcast-FMAs (frees the MXU);
    switch to jnp.dot if the real module has >=128 input channels.
    """
    cin = x_ref.shape[1]
    cout = h0_ref.shape[1]
    xm = x_ref[0].astype(jnp.float32) * m_ref[0].astype(jnp.float32)     # (Cin, T)
    w = w_ref[...].astype(jnp.float32)                                   # (2C, Cin)
    acc = w[:, 0:1] * xm[0:1, :]
    for k in range(1, cin):                                              # static unroll
        acc = acc + w[:, k:k + 1] * xm[k:k + 1, :]
    out = acc + b_ref[...]                                               # (2C, T) f32
    h0 = out[:cout, :]
    h1 = out[cout:, :]
    h0_ref[0] = h0
    h1_ref[0] = h1
    d = h0 - h1
    # Per-tile partial sum (finished as a mean in XLA) keeps both grid axes
    # "parallel" (v7x megacore) instead of an "arbitrary" accumulator axis.
    ps_ref[0] = jnp.broadcast_to(jnp.sum(d * d), (8, 128))


def _pyramid_kernel(x_ref, m_ref,
                    awt1_ref, g1_ref, ahm1_ref, awtm1_ref, bt1_ref,
                    awt2_ref, g2_ref, ahm2_ref, awtm2_ref, bt2_ref,
                    o1_ref, o2_ref):
    """Fused per-image pyramid branch: downsample x & mask to BOTH scales and
    apply the masked h0-conv, sharing one read of x / mask.

    x block (1, Cin*H, W) bf16 (row index = c*H + h), m block (1, Hm, Wm) bf16.
    Per scale (all resident trace-time constants):
      awt  (W, sw)          : x W-pass
      g    (Cout*sh, Cin*H) : kron(w0, AH) -> fused 1x1-conv + H-pass (dense)
      ahm  (Cout*sh, Hm)    : tile(AH_mask, Cout) (pre-tiled -> no in-kernel tile)
      awtm (Wm, sw)         : mask W-pass
      bt   (Cout*sh, 1)     : bias, each b0[c] repeated sh times
    Uses (W0 · x_down) * m_down + b == W0 · (x_down * m_down) + b (mask is
    per-pixel, so the 1x1 conv commutes with the mask multiply). Pure 2-D dots.
    """
    x2 = x_ref[0]                                                        # (Cin*H, W) bf16
    m2 = m_ref[0]                                                        # (Hm, Wm)  bf16

    def branch(awt_ref, g_ref, ahm_ref, awtm_ref, bt_ref, o_ref):
        t = jnp.dot(x2, awt_ref[...], preferred_element_type=jnp.float32)          # (Cin*H, sw)
        pre = jnp.dot(g_ref[...], t.astype(jnp.bfloat16),
                      preferred_element_type=jnp.float32)                           # (Cout*sh, sw)
        mt = jnp.dot(m2, awtm_ref[...], preferred_element_type=jnp.float32)         # (Hm, sw)
        md = jnp.dot(ahm_ref[...], mt.astype(jnp.bfloat16),
                     preferred_element_type=jnp.float32)                            # (Cout*sh, sw)
        o_ref[0] = pre * md + bt_ref[...]

    branch(awt1_ref, g1_ref, ahm1_ref, awtm1_ref, bt1_ref, o1_ref)
    branch(awt2_ref, g2_ref, ahm2_ref, awtm2_ref, bt2_ref, o2_ref)


def _upmax_kernel(h0_ref, l1_ref, l2_ref, ah1_ref, awt1_ref, ah2_ref, awt2_ref, o_ref):
    """max(h0, up(l1), up(l2)) on a (Bt, Hl, Wl) block.

    Bilinear upsample = two batched MXU matmuls against SHARED (sh->Hl)/(sw->Wl)
    matrices (no block-diagonal kron). Sequenced as max(h0,u1) then u2 to cap
    live intermediates.
    """
    def up(l_ref, ah_ref, awt_ref):
        l = l_ref[...].astype(jnp.bfloat16)                              # (Bt, sh, sw)
        bt = l.shape[0]
        awt = jnp.broadcast_to(awt_ref[...], (bt,) + tuple(awt_ref.shape))
        ah = jnp.broadcast_to(ah_ref[...], (bt,) + tuple(ah_ref.shape))
        t = jnp.einsum('bhw,bwj->bhj', l, awt,
                       preferred_element_type=jnp.float32).astype(jnp.bfloat16)
        return jnp.einsum('bih,bhj->bij', ah, t, preferred_element_type=jnp.float32)

    o = jnp.maximum(h0_ref[...], up(l1_ref, ah1_ref, awt1_ref))
    o_ref[...] = jnp.maximum(o, up(l2_ref, ah2_ref, awt2_ref))


def _mask_resize_kernel(ah_ref, awt_ref, m_ref, o_ref):
    """Per-image bilinear resize of the mask (only used if mask res != x res)."""
    t = jnp.dot(m_ref[0], awt_ref[...], preferred_element_type=jnp.float32)
    o_ref[0] = jnp.dot(ah_ref[...].astype(jnp.float32), t,
                       preferred_element_type=jnp.float32)


def _resize_mask_full(m_bf, H, W):
    """(N,1,Hm,Wm) -> (N,1,H,W) bilinear. Not exercised at demo shapes."""
    N, _, Hm, Wm = map(int, m_bf.shape)
    ah = jnp.asarray(_interp_matrix(H, Hm)).astype(jnp.bfloat16)
    awt = jnp.asarray(_interp_matrix(W, Wm).T).astype(jnp.bfloat16)
    out = pl.pallas_call(
        _mask_resize_kernel,
        grid=(N,),
        in_specs=[pl.BlockSpec((H, Hm), lambda n: (0, 0)),
                  pl.BlockSpec((Wm, W), lambda n: (0, 0)),
                  pl.BlockSpec((1, Hm, Wm), lambda n: (n, 0, 0))],
        out_specs=pl.BlockSpec((1, H, W), lambda n: (n, 0, 0)),
        out_shape=jax.ShapeDtypeStruct((N, H, W), jnp.float32),
        compiler_params=pltpu.CompilerParams(dimension_semantics=("parallel",)),
    )(ah, awt, m_bf.reshape(N, Hm, Wm))
    return out.reshape(N, 1, H, W).astype(jnp.bfloat16)


# ---------------------------------------------------------------------------
# MSCC forward
# ---------------------------------------------------------------------------

def mscc_forward(x, mask, params, training=False):
    N, Cin, H, W = map(int, x.shape)
    Cout = int(params["w0"].shape[0])
    Hm, Wm = int(mask.shape[2]), int(mask.shape[3])
    HW = H * W

    x_bf = x.astype(jnp.bfloat16)       # bf16 HBM/VMEM traffic, f32 accumulation
    m_bf = mask.astype(jnp.bfloat16)    # {0,1} exact in bf16

    mask_full_bf = _resize_mask_full(m_bf, H, W) if (Hm, Wm) != (H, W) else m_bf

    # ---- full-res scale(): fused dual 1x1 conv + MSE partials ---------------
    # Lane-axis tile T (multiple of 128). TODO(synk): per-generation sweep at
    # production NHW (start 2048-8192; halve for v7x's 64 MiB VMEM; raise
    # vmem_limit_bytes via CompilerParams on v6e).
    if HW % 512 == 0:
        T = 512
    elif HW % 128 == 0:
        T = 128
    else:
        T = HW
    nt = HW // T

    w01 = jnp.concatenate([params["w0"], params["w1"]], axis=0).astype(jnp.bfloat16)
    b01 = jnp.concatenate([params["b0"], params["b1"]], axis=0)
    b01 = b01.reshape(2 * Cout, 1).astype(jnp.float32)
    x_l = x_bf.reshape(N, Cin, HW)              # contiguity-preserving reshapes only
    m_l = mask_full_bf.reshape(N, 1, HW)

    h0f, h1f, ps = pl.pallas_call(
        _scale_fused_kernel,
        grid=(N, nt),
        in_specs=[
            pl.BlockSpec((1, Cin, T), lambda n, t: (n, 0, t)),
            pl.BlockSpec((1, 1, T), lambda n, t: (n, 0, t)),
            pl.BlockSpec((2 * Cout, Cin), lambda n, t: (0, 0)),   # resident weights
            pl.BlockSpec((2 * Cout, 1), lambda n, t: (0, 0)),     # resident bias
        ],
        out_specs=(
            pl.BlockSpec((1, Cout, T), lambda n, t: (n, 0, t)),
            pl.BlockSpec((1, Cout, T), lambda n, t: (n, 0, t)),
            pl.BlockSpec((1, 8, 128), lambda n, t: (n * nt + t, 0, 0)),
        ),
        out_shape=(
            jax.ShapeDtypeStruct((N, Cout, HW), jnp.float32),
            jax.ShapeDtypeStruct((N, Cout, HW), jnp.float32),
            jax.ShapeDtypeStruct((N * nt, 8, 128), jnp.float32),
        ),
        compiler_params=pltpu.CompilerParams(
            dimension_semantics=("parallel", "parallel")),
    )(x_l, m_l, w01, b01)

    KLD = ps[:, 0, 0].sum() / (N * Cout * HW)
    h0 = h0f.reshape(N, Cout, H, W)
    h1 = h1f.reshape(N, Cout, H, W)

    # ---- pyramid branches: one fused kernel for both scales -----------------
    sizes = [(int(H * p), int(W * p)) for p in PYRAMIDS]
    assert len(sizes) == 2

    mats, mat_specs = [], []
    w0f = params["w0"].astype(jnp.float32)
    b0f = params["b0"].astype(jnp.float32)
    for (sh, sw) in sizes:
        ah_np = _interp_matrix(sh, H)                                          # (sh, H)
        awt = jnp.asarray(_interp_matrix(sw, W).T).astype(jnp.bfloat16)        # (W, sw)
        g = jnp.kron(w0f, jnp.asarray(ah_np)).astype(jnp.bfloat16)             # (Cout*sh, Cin*H)
        ahm = jnp.asarray(np.tile(_interp_matrix(sh, Hm), (Cout, 1))).astype(jnp.bfloat16)
        awtm = jnp.asarray(_interp_matrix(sw, Wm).T).astype(jnp.bfloat16)      # (Wm, sw)
        bt = jnp.repeat(b0f, sh)[:, None]                                      # (Cout*sh, 1)
        mats += [awt, g, ahm, awtm, bt]
        mat_specs += [
            pl.BlockSpec((W, sw), lambda n: (0, 0)),
            pl.BlockSpec((Cout * sh, Cin * H), lambda n: (0, 0)),
            pl.BlockSpec((Cout * sh, Hm), lambda n: (0, 0)),
            pl.BlockSpec((Wm, sw), lambda n: (0, 0)),
            pl.BlockSpec((Cout * sh, 1), lambda n: (0, 0)),
        ]

    (s1h, s1w), (s2h, s2w) = sizes
    x_p = x_bf.reshape(N, Cin * H, W)
    m_p = m_bf.reshape(N, Hm, Wm)

    o1, o2 = pl.pallas_call(
        _pyramid_kernel,
        grid=(N,),
        in_specs=[pl.BlockSpec((1, Cin * H, W), lambda n: (n, 0, 0)),
                  pl.BlockSpec((1, Hm, Wm), lambda n: (n, 0, 0))] + mat_specs,
        out_specs=(pl.BlockSpec((1, Cout * s1h, s1w), lambda n: (n, 0, 0)),
                   pl.BlockSpec((1, Cout * s2h, s2w), lambda n: (n, 0, 0))),
        out_shape=(jax.ShapeDtypeStruct((N, Cout * s1h, s1w), jnp.float32),
                   jax.ShapeDtypeStruct((N, Cout * s2h, s2w), jnp.float32)),
        compiler_params=pltpu.CompilerParams(dimension_semantics=("parallel",)),
    )(x_p, m_p, *mats)

    # ---- fused (upsample x2 -> 3-way max) kernel -----------------------------
    NB = N * Cout
    Bt = 8 if NB % 8 == 0 else 1
    h0r = h0f.reshape(NB, H, W)
    l1r = o1.reshape(NB, s1h, s1w)
    l2r = o2.reshape(NB, s2h, s2w)
    ah1u = jnp.asarray(_interp_matrix(H, s1h)).astype(jnp.bfloat16)            # (H, s1h)
    awt1u = jnp.asarray(_interp_matrix(W, s1w).T).astype(jnp.bfloat16)         # (s1w, W)
    ah2u = jnp.asarray(_interp_matrix(H, s2h)).astype(jnp.bfloat16)
    awt2u = jnp.asarray(_interp_matrix(W, s2w).T).astype(jnp.bfloat16)

    lmax = pl.pallas_call(
        _upmax_kernel,
        grid=(NB // Bt,),
        in_specs=[
            pl.BlockSpec((Bt, H, W), lambda b: (b, 0, 0)),
            pl.BlockSpec((Bt, s1h, s1w), lambda b: (b, 0, 0)),
            pl.BlockSpec((Bt, s2h, s2w), lambda b: (b, 0, 0)),
            pl.BlockSpec((H, s1h), lambda b: (0, 0)),
            pl.BlockSpec((s1w, W), lambda b: (0, 0)),
            pl.BlockSpec((H, s2h), lambda b: (0, 0)),
            pl.BlockSpec((s2w, W), lambda b: (0, 0)),
        ],
        out_specs=pl.BlockSpec((Bt, H, W), lambda b: (b, 0, 0)),
        out_shape=jax.ShapeDtypeStruct((NB, H, W), jnp.float32),
        compiler_params=pltpu.CompilerParams(dimension_semantics=("parallel",)),
    )(h0r, l1r, l2r, ah1u, awt1u, ah2u, awt2u)
    logits_max = lmax.reshape(N, Cout, H, W)

    if training:
        logits_h0 = [h0,
                     o1.reshape(N, Cout, s1h, s1w),
                     o2.reshape(N, Cout, s2h, s2w),
                     logits_max]
    else:
        logits_h0 = logits_max
    return KLD, logits_h0, h0, h1


# ---------------------------------------------------------------------------

if __name__ == "__main__":
    N, Cin, H, W = 2, 4, 16, 16
    Cout = 8

    key = jax.random.PRNGKey(0)
    kx, km = jax.random.split(key)
    x = jax.random.normal(kx, (N, Cin, H, W), jnp.float32)
    mask = (jax.random.uniform(km, (N, 1, H, W)) > 0.3).astype(jnp.float32)

    wkey = jax.random.PRNGKey(1)
    k0, k1, k2, k3 = jax.random.split(wkey, 4)
    params = {
        "w0": jax.random.normal(k0, (Cout, Cin), jnp.float32) * 0.1,
        "b0": jax.random.normal(k1, (Cout,), jnp.float32) * 0.01,
        "w1": jax.random.normal(k2, (Cout, Cin), jnp.float32) * 0.1,
        "b1": jax.random.normal(k3, (Cout,), jnp.float32) * 0.01,
    }

    KLD, logits_h0, h0, h1 = jax.jit(mscc_forward)(x, mask, params)
    jax.block_until_ready((KLD, logits_h0, h0, h1))
    print("KERNEL_OK")
</pallas_src>

<mosaic_0001>
module attributes {stable_mosaic.version = 11 : i64} {
  func.func @_scale_fused_kernel(%arg0: i32, %arg1: i32, %arg2: memref<1x4x128xbf16, #tpu.memory_space<vmem>>, %arg3: memref<1x1x128xbf16, #tpu.memory_space<vmem>>, %arg4: memref<16x4xbf16, #tpu.memory_space<vmem>>, %arg5: memref<16x1xf32, #tpu.memory_space<vmem>>, %arg6: memref<1x8x128xf32, #tpu.memory_space<vmem>>, %arg7: memref<1x8x128xf32, #tpu.memory_space<vmem>>, %arg8: memref<1x8x128xf32, #tpu.memory_space<vmem>>) attributes {dimension_semantics = [#tpu.dimension_semantics<parallel>, #tpu.dimension_semantics<parallel>], iteration_bounds = array<i64: 2, 2>, scalar_prefetch = 0 : i64, scratch_operands = 0 : i64, tpu.core_type = #tpu.core_type<tc>, window_params = [{transform_indices = @transform_0, window_bounds = array<i64: 1, 4, 128>}, {transform_indices = @transform_1, window_bounds = array<i64: 1, 1, 128>}, {pipeline_mode = #tpu.pipeline_mode<synchronous>, transform_indices = @transform_2, window_bounds = array<i64: 16, 4>}, {pipeline_mode = #tpu.pipeline_mode<synchronous>, transform_indices = @transform_3, window_bounds = array<i64: 16, 1>}, {transform_indices = @transform_4, window_bounds = array<i64: 1, 8, 128>}, {transform_indices = @transform_5, window_bounds = array<i64: 1, 8, 128>}, {transform_indices = @transform_6, window_bounds = array<i64: 1, 8, 128>}]} {
    %c0 = arith.constant 0 : index
    %c0_0 = arith.constant 0 : index
    %c0_1 = arith.constant 0 : index
    %0 = vector.load %arg2[%c0, %c0_0, %c0_1] : memref<1x4x128xbf16, #tpu.memory_space<vmem>>, vector<1x4x128xbf16>
    %1 = vector.shape_cast %0 : vector<1x4x128xbf16> to vector<4x128xbf16>
    %2 = arith.extf %1 : vector<4x128xbf16> to vector<4x128xf32>
    %c0_2 = arith.constant 0 : index
    %c0_3 = arith.constant 0 : index
    %c0_4 = arith.constant 0 : index
    %3 = vector.load %arg3[%c0_2, %c0_3, %c0_4] : memref<1x1x128xbf16, #tpu.memory_space<vmem>>, vector<1x1x128xbf16>
    %4 = vector.shape_cast %3 : vector<1x1x128xbf16> to vector<1x128xbf16>
    %5 = arith.extf %4 : vector<1x128xbf16> to vector<1x128xf32>
    %6 = vector.broadcast %5 : vector<1x128xf32> to vector<4x128xf32>
    %7 = arith.mulf %2, %6 : vector<4x128xf32>
    %c0_5 = arith.constant 0 : index
    %c0_6 = arith.constant 0 : index
    %8 = vector.load %arg4[%c0_5, %c0_6] : memref<16x4xbf16, #tpu.memory_space<vmem>>, vector<16x4xbf16>
    %9 = arith.extf %8 : vector<16x4xbf16> to vector<16x4xf32>
    %10 = vector.extract_strided_slice %9 {offsets = [0, 0], sizes = [16, 1], strides = [1, 1]} : vector<16x4xf32> to vector<16x1xf32>
    %11 = vector.extract_strided_slice %7 {offsets = [0, 0], sizes = [1, 128], strides = [1, 1]} : vector<4x128xf32> to vector<1x128xf32>
    %12 = vector.broadcast %10 : vector<16x1xf32> to vector<16x128xf32>
    %13 = vector.broadcast %11 : vector<1x128xf32> to vector<16x128xf32>
    %14 = arith.mulf %12, %13 : vector<16x128xf32>
    %15 = vector.extract_strided_slice %9 {offsets = [0, 1], sizes = [16, 1], strides = [1, 1]} : vector<16x4xf32> to vector<16x1xf32>
    %16 = vector.extract_strided_slice %7 {offsets = [1, 0], sizes = [1, 128], strides = [1, 1]} : vector<4x128xf32> to vector<1x128xf32>
    %17 = vector.broadcast %15 : vector<16x1xf32> to vector<16x128xf32>
    %18 = vector.broadcast %16 : vector<1x128xf32> to vector<16x128xf32>
    %19 = arith.mulf %17, %18 : vector<16x128xf32>
    %20 = arith.addf %14, %19 : vector<16x128xf32>
    %21 = vector.extract_strided_slice %9 {offsets = [0, 2], sizes = [16, 1], strides = [1, 1]} : vector<16x4xf32> to vector<16x1xf32>
    %22 = vector.extract_strided_slice %7 {offsets = [2, 0], sizes = [1, 128], strides = [1, 1]} : vector<4x128xf32> to vector<1x128xf32>
    %23 = vector.broadcast %21 : vector<16x1xf32> to vector<16x128xf32>
    %24 = vector.broadcast %22 : vector<1x128xf32> to vector<16x128xf32>
    %25 = arith.mulf %23, %24 : vector<16x128xf32>
    %26 = arith.addf %20, %25 : vector<16x128xf32>
    %27 = vector.extract_strided_slice %9 {offsets = [0, 3], sizes = [16, 1], strides = [1, 1]} : vector<16x4xf32> to vector<16x1xf32>
    %28 = vector.extract_strided_slice %7 {offsets = [3, 0], sizes = [1, 128], strides = [1, 1]} : vector<4x128xf32> to vector<1x128xf32>
    %29 = vector.broadcast %27 : vector<16x1xf32> to vector<16x128xf32>
    %30 = vector.broadcast %28 : vector<1x128xf32> to vector<16x128xf32>
    %31 = arith.mulf %29, %30 : vector<16x128xf32>
    %32 = arith.addf %26, %31 : vector<16x128xf32>
    %c0_7 = arith.constant 0 : index
    %c0_8 = arith.constant 0 : index
    %33 = vector.load %arg5[%c0_7, %c0_8] : memref<16x1xf32, #tpu.memory_space<vmem>>, vector<16x1xf32>
    %34 = vector.broadcast %33 : vector<16x1xf32> to vector<16x128xf32>
    %35 = arith.addf %32, %34 : vector<16x128xf32>
    %36 = vector.extract_strided_slice %35 {offsets = [0, 0], sizes = [8, 128], strides = [1, 1]} : vector<16x128xf32> to vector<8x128xf32>
    %37 = vector.extract_strided_slice %35 {offsets = [8, 0], sizes = [8, 128], strides = [1, 1]} : vector<16x128xf32> to vector<8x128xf32>
    %c0_9 = arith.constant 0 : index
    %c0_10 = arith.constant 0 : index
    %c0_11 = arith.constant 0 : index
    %38 = vector.load %arg6[%c0_9, %c0_10, %c0_11] : memref<1x8x128xf32, #tpu.memory_space<vmem>>, vector<1x8x128xf32>
    %39 = vector.shape_cast %38 : vector<1x8x128xf32> to vector<8x128xf32>
    %40 = vector.shape_cast %36 : vector<8x128xf32> to vector<1x8x128xf32>
    tpu.vector_store %arg6[%c0_9, %c0_10, %c0_11], %40 {strides = array<i32>} : memref<1x8x128xf32, #tpu.memory_space<vmem>>, vector<1x8x128xf32>,
    %c0_12 = arith.constant 0 : index
    %c0_13 = arith.constant 0 : index
    %c0_14 = arith.constant 0 : index
    %41 = vector.load %arg7[%c0_12, %c0_13, %c0_14] : memref<1x8x128xf32, #tpu.memory_space<vmem>>, vector<1x8x128xf32>
    %42 = vector.shape_cast %41 : vector<1x8x128xf32> to vector<8x128xf32>
    %43 = vector.shape_cast %37 : vector<8x128xf32> to vector<1x8x128xf32>
    tpu.vector_store %arg7[%c0_12, %c0_13, %c0_14], %43 {strides = array<i32>} : memref<1x8x128xf32, #tpu.memory_space<vmem>>, vector<1x8x128xf32>,
    %44 = arith.subf %36, %37 : vector<8x128xf32>
    %45 = arith.mulf %44, %44 : vector<8x128xf32>
    %46 = vector.shape_cast %45 : vector<8x128xf32> to vector<1x8x128xf32>
    %cst = arith.constant dense<0.000000e+00> : vector<1xf32>
    %47 = vector.multi_reduction <add>, %46, %cst [1, 2] : vector<1x8x128xf32> to vector<1xf32>
    %48 = vector.shape_cast %47 : vector<1xf32> to vector<1x1x1xf32>
    %49 = vector.extract %48[0, 0, 0] : f32 from vector<1x1x1xf32>
    %50 = vector.broadcast %49 : f32 to vector<8x128xf32>
    %c0_15 = arith.constant 0 : index
    %c0_16 = arith.constant 0 : index
    %c0_17 = arith.constant 0 : index
    %51 = vector.load %arg8[%c0_15, %c0_16, %c0_17] : memref<1x8x128xf32, #tpu.memory_space<vmem>>, vector<1x8x128xf32>
    %52 = vector.shape_cast %51 : vector<1x8x128xf32> to vector<8x128xf32>
    %53 = vector.shape_cast %50 : vector<8x128xf32> to vector<1x8x128xf32>
    tpu.vector_store %arg8[%c0_15, %c0_16, %c0_17], %53 {strides = array<i32>} : memref<1x8x128xf32, #tpu.memory_space<vmem>>, vector<1x8x128xf32>,
    return
  }
  func.func @transform_0(%arg0: i32, %arg1: i32) -> (i32, i32, i32) {
    %c0_i32 = arith.constant 0 : i32
    %c0_i32_0 = arith.constant 0 : i32
    return %arg0, %c0_i32, %arg1 : i32, i32, i32
  }
  func.func @transform_1(%arg0: i32, %arg1: i32) -> (i32, i32, i32) {
    %c0_i32 = arith.constant 0 : i32
    %c0_i32_0 = arith.constant 0 : i32
    return %arg0, %c0_i32, %arg1 : i32, i32, i32
  }
  func.func @transform_2(%arg0: i32, %arg1: i32) -> (i32, i32) {
    %c0_i32 = arith.constant 0 : i32
    %c0_i32_0 = arith.constant 0 : i32
    %c0_i32_1 = arith.constant 0 : i32
    return %c0_i32, %c0_i32_0 : i32, i32
  }
  func.func @transform_3(%arg0: i32, %arg1: i32) -> (i32, i32) {
    %c0_i32 = arith.constant 0 : i32
    %c0_i32_0 = arith.constant 0 : i32
    %c0_i32_1 = arith.constant 0 : i32
    return %c0_i32, %c0_i32_0 : i32, i32
  }
  func.func @transform_4(%arg0: i32, %arg1: i32) -> (i32, i32, i32) {
    %c0_i32 = arith.constant 0 : i32
    %c0_i32_0 = arith.constant 0 : i32
    return %arg0, %c0_i32, %arg1 : i32, i32, i32
  }
  func.func @transform_5(%arg0: i32, %arg1: i32) -> (i32, i32, i32) {
    %c0_i32 = arith.constant 0 : i32
    %c0_i32_0 = arith.constant 0 : i32
    return %arg0, %c0_i32, %arg1 : i32, i32, i32
  }
  func.func @transform_6(%arg0: i32, %arg1: i32) -> (i32, i32, i32) {
    %c2_i32 = arith.constant 2 : i32
    %0 = arith.muli %arg0, %c2_i32 : i32
    %1 = arith.addi %0, %arg1 : i32
    %c0_i32 = arith.constant 0 : i32
    %c0_i32_0 = arith.constant 0 : i32
    %c0_i32_1 = arith.constant 0 : i32
    return %1, %c0_i32, %c0_i32_0 : i32, i32, i32
  }
}

module attributes {stable_mosaic.version = 11 : i64} {
  func.func @_pyramid_kernel(%arg0: i32, %arg1: memref<1x64x16xbf16, #tpu.memory_space<vmem>>, %arg2: memref<1x16x16xbf16, #tpu.memory_space<vmem>>, %arg3: memref<16x8xbf16, #tpu.memory_space<vmem>>, %arg4: memref<64x64xbf16, #tpu.memory_space<vmem>>, %arg5: memref<64x16xbf16, #tpu.memory_space<vmem>>, %arg6: memref<16x8xbf16, #tpu.memory_space<vmem>>, %arg7: memref<64x1xf32, #tpu.memory_space<vmem>>, %arg8: memref<16x12xbf16, #tpu.memory_space<vmem>>, %arg9: memref<96x64xbf16, #tpu.memory_space<vmem>>, %arg10: memref<96x16xbf16, #tpu.memory_space<vmem>>, %arg11: memref<16x12xbf16, #tpu.memory_space<vmem>>, %arg12: memref<96x1xf32, #tpu.memory_space<vmem>>, %arg13: memref<1x64x8xf32, #tpu.memory_space<vmem>>, %arg14: memref<1x96x12xf32, #tpu.memory_space<vmem>>) attributes {dimension_semantics = [#tpu.dimension_semantics<parallel>], iteration_bounds = array<i64: 2>, scalar_prefetch = 0 : i64, scratch_operands = 0 : i64, tpu.core_type = #tpu.core_type<tc>, window_params = [{transform_indices = @transform_0, window_bounds = array<i64: 1, 64, 16>}, {transform_indices = @transform_1, window_bounds = array<i64: 1, 16, 16>}, {pipeline_mode = #tpu.pipeline_mode<synchronous>, transform_indices = @transform_2, window_bounds = array<i64: 16, 8>}, {pipeline_mode = #tpu.pipeline_mode<synchronous>, transform_indices = @transform_3, window_bounds = array<i64: 64, 64>}, {pipeline_mode = #tpu.pipeline_mode<synchronous>, transform_indices = @transform_4, window_bounds = array<i64: 64, 16>}, {pipeline_mode = #tpu.pipeline_mode<synchronous>, transform_indices = @transform_5, window_bounds = array<i64: 16, 8>}, {pipeline_mode = #tpu.pipeline_mode<synchronous>, transform_indices = @transform_6, window_bounds = array<i64: 64, 1>}, {pipeline_mode = #tpu.pipeline_mode<synchronous>, transform_indices = @transform_7, window_bounds = array<i64: 16, 12>}, {pipeline_mode = #tpu.pipeline_mode<synchronous>, transform_indices = @transform_8, window_bounds = array<i64: 96, 64>}, {pipeline_mode = #tpu.pipeline_mode<synchronous>, transform_indices = @transform_9, window_bounds = array<i64: 96, 16>}, {pipeline_mode = #tpu.pipeline_mode<synchronous>, transform_indices = @transform_10, window_bounds = array<i64: 16, 12>}, {pipeline_mode = #tpu.pipeline_mode<synchronous>, transform_indices = @transform_11, window_bounds = array<i64: 96, 1>}, {transform_indices = @transform_12, window_bounds = array<i64: 1, 64, 8>}, {transform_indices = @transform_13, window_bounds = array<i64: 1, 96, 12>}]} {
    %c0 = arith.constant 0 : index
    %c0_0 = arith.constant 0 : index
    %c0_1 = arith.constant 0 : index
    %0 = vector.load %arg1[%c0, %c0_0, %c0_1] : memref<1x64x16xbf16, #tpu.memory_space<vmem>>, vector<1x64x16xbf16>
    %1 = vector.shape_cast %0 : vector<1x64x16xbf16> to vector<64x16xbf16>
    %c0_2 = arith.constant 0 : index
    %c0_3 = arith.constant 0 : index
    %c0_4 = arith.constant 0 : index
    %2 = vector.load %arg2[%c0_2, %c0_3, %c0_4] : memref<1x16x16xbf16, #tpu.memory_space<vmem>>, vector<1x16x16xbf16>
    %3 = vector.shape_cast %2 : vector<1x16x16xbf16> to vector<16x16xbf16>
    %c0_5 = arith.constant 0 : index
    %c0_6 = arith.constant 0 : index
    %4 = vector.load %arg3[%c0_5, %c0_6] : memref<16x8xbf16, #tpu.memory_space<vmem>>, vector<16x8xbf16>
    %cst = arith.constant dense<0.000000e+00> : vector<64x8xf32>
    %5 = tpu.matmul %1, %4, %cst {dimension_numbers = #tpu.dot_dimension_numbers<[1], [0], [0], [1], [0, 0, 1, 1], [], []>} : vector<64x16xbf16>, vector<16x8xbf16>, vector<64x8xf32> -> vector<64x8xf32>
    %c0_7 = arith.constant 0 : index
    %c0_8 = arith.constant 0 : index
    %6 = vector.load %arg4[%c0_7, %c0_8] : memref<64x64xbf16, #tpu.memory_space<vmem>>, vector<64x64xbf16>
    %7 = arith.truncf %5 : vector<64x8xf32> to vector<64x8xbf16>
    %cst_9 = arith.constant dense<0.000000e+00> : vector<64x8xf32>
    %8 = tpu.matmul %6, %7, %cst_9 {dimension_numbers = #tpu.dot_dimension_numbers<[1], [0], [0], [1], [0, 0, 1, 1], [], []>} : vector<64x64xbf16>, vector<64x8xbf16>, vector<64x8xf32> -> vector<64x8xf32>
    %c0_10 = arith.constant 0 : index
    %c0_11 = arith.constant 0 : index
    %9 = vector.load %arg6[%c0_10, %c0_11] : memref<16x8xbf16, #tpu.memory_space<vmem>>, vector<16x8xbf16>
    %cst_12 = arith.constant dense<0.000000e+00> : vector<16x8xf32>
    %10 = tpu.matmul %3, %9, %cst_12 {dimension_numbers = #tpu.dot_dimension_numbers<[1], [0], [0], [1], [0, 0, 1, 1], [], []>} : vector<16x16xbf16>, vector<16x8xbf16>, vector<16x8xf32> -> vector<16x8xf32>
    %c0_13 = arith.constant 0 : index
    %c0_14 = arith.constant 0 : index
    %11 = vector.load %arg5[%c0_13, %c0_14] : memref<64x16xbf16, #tpu.memory_space<vmem>>, vector<64x16xbf16>
    %12 = arith.truncf %10 : vector<16x8xf32> to vector<16x8xbf16>
    %cst_15 = arith.constant dense<0.000000e+00> : vector<64x8xf32>
    %13 = tpu.matmul %11, %12, %cst_15 {dimension_numbers = #tpu.dot_dimension_numbers<[1], [0], [0], [1], [0, 0, 1, 1], [], []>} : vector<64x16xbf16>, vector<16x8xbf16>, vector<64x8xf32> -> vector<64x8xf32>
    %14 = arith.mulf %8, %13 : vector<64x8xf32>
    %c0_16 = arith.constant 0 : index
    %c0_17 = arith.constant 0 : index
    %15 = vector.load %arg7[%c0_16, %c0_17] : memref<64x1xf32, #tpu.memory_space<vmem>>, vector<64x1xf32>
    %16 = vector.broadcast %15 : vector<64x1xf32> to vector<64x8xf32>
    %17 = arith.addf %14, %16 : vector<64x8xf32>
    %c0_18 = arith.constant 0 : index
    %c0_19 = arith.constant 0 : index
    %c0_20 = arith.constant 0 : index
    %18 = vector.load %arg13[%c0_18, %c0_19, %c0_20] : memref<1x64x8xf32, #tpu.memory_space<vmem>>, vector<1x64x8xf32>
    %19 = vector.shape_cast %18 : vector<1x64x8xf32> to vector<64x8xf32>
    %20 = vector.shape_cast %17 : vector<64x8xf32> to vector<1x64x8xf32>
    tpu.vector_store %arg13[%c0_18, %c0_19, %c0_20], %20 {strides = array<i32>} : memref<1x64x8xf32, #tpu.memory_space<vmem>>, vector<1x64x8xf32>,
    %c0_21 = arith.constant 0 : index
    %c0_22 = arith.constant 0 : index
    %21 = vector.load %arg8[%c0_21, %c0_22] : memref<16x12xbf16, #tpu.memory_space<vmem>>, vector<16x12xbf16>
    %cst_23 = arith.constant dense<0.000000e+00> : vector<64x12xf32>
    %22 = tpu.matmul %1, %21, %cst_23 {dimension_numbers = #tpu.dot_dimension_numbers<[1], [0], [0], [1], [0, 0, 1, 1], [], []>} : vector<64x16xbf16>, vector<16x12xbf16>, vector<64x12xf32> -> vector<64x12xf32>
    %c0_24 = arith.constant 0 : index
    %c0_25 = arith.constant 0 : index
    %23 = vector.load %arg9[%c0_24, %c0_25] : memref<96x64xbf16, #tpu.memory_space<vmem>>, vector<96x64xbf16>
    %24 = arith.truncf %22 : vector<64x12xf32> to vector<64x12xbf16>
    %cst_26 = arith.constant dense<0.000000e+00> : vector<96x12xf32>
    %25 = tpu.matmul %23, %24, %cst_26 {dimension_numbers = #tpu.dot_dimension_numbers<[1], [0], [0], [1], [0, 0, 1, 1], [], []>} : vector<96x64xbf16>, vector<64x12xbf16>, vector<96x12xf32> -> vector<96x12xf32>
    %c0_27 = arith.constant 0 : index
    %c0_28 = arith.constant 0 : index
    %26 = vector.load %arg11[%c0_27, %c0_28] : memref<16x12xbf16, #tpu.memory_space<vmem>>, vector<16x12xbf16>
    %cst_29 = arith.constant dense<0.000000e+00> : vector<16x12xf32>
    %27 = tpu.matmul %3, %26, %cst_29 {dimension_numbers = #tpu.dot_dimension_numbers<[1], [0], [0], [1], [0, 0, 1, 1], [], []>} : vector<16x16xbf16>, vector<16x12xbf16>, vector<16x12xf32> -> vector<16x12xf32>
    %c0_30 = arith.constant 0 : index
    %c0_31 = arith.constant 0 : index
    %28 = vector.load %arg10[%c0_30, %c0_31] : memref<96x16xbf16, #tpu.memory_space<vmem>>, vector<96x16xbf16>
    %29 = arith.truncf %27 : vector<16x12xf32> to vector<16x12xbf16>
    %cst_32 = arith.constant dense<0.000000e+00> : vector<96x12xf32>
    %30 = tpu.matmul %28, %29, %cst_32 {dimension_numbers = #tpu.dot_dimension_numbers<[1], [0], [0], [1], [0, 0, 1, 1], [], []>} : vector<96x16xbf16>, vector<16x12xbf16>, vector<96x12xf32> -> vector<96x12xf32>
    %31 = arith.mulf %25, %30 : vector<96x12xf32>
    %c0_33 = arith.constant 0 : index
    %c0_34 = arith.constant 0 : index
    %32 = vector.load %arg12[%c0_33, %c0_34] : memref<96x1xf32, #tpu.memory_space<vmem>>, vector<96x1xf32>
    %33 = vector.broadcast %32 : vector<96x1xf32> to vector<96x12xf32>
    %34 = arith.addf %31, %33 : vector<96x12xf32>
    %c0_35 = arith.constant 0 : index
    %c0_36 = arith.constant 0 : index
    %c0_37 = arith.constant 0 : index
    %35 = vector.load %arg14[%c0_35, %c0_36, %c0_37] : memref<1x96x12xf32, #tpu.memory_space<vmem>>, vector<1x96x12xf32>
    %36 = vector.shape_cast %35 : vector<1x96x12xf32> to vector<96x12xf32>
    %37 = vector.shape_cast %34 : vector<96x12xf32> to vector<1x96x12xf32>
    tpu.vector_store %arg14[%c0_35, %c0_36, %c0_37], %37 {strides = array<i32>} : memref<1x96x12xf32, #tpu.memory_space<vmem>>, vector<1x96x12xf32>,
    return
  }
  func.func @transform_0(%arg0: i32) -> (i32, i32, i32) {
    %c0_i32 = arith.constant 0 : i32
    %c0_i32_0 = arith.constant 0 : i32
    %c0_i32_1 = arith.constant 0 : i32
    return %arg0, %c0_i32, %c0_i32_0 : i32, i32, i32
  }
  func.func @transform_1(%arg0: i32) -> (i32, i32, i32) {
    %c0_i32 = arith.constant 0 : i32
    %c0_i32_0 = arith.constant 0 : i32
    %c0_i32_1 = arith.constant 0 : i32
    return %arg0, %c0_i32, %c0_i32_0 : i32, i32, i32
  }
  func.func @transform_2(%arg0: i32) -> (i32, i32) {
    %c0_i32 = arith.constant 0 : i32
    %c0_i32_0 = arith.constant 0 : i32
    %c0_i32_1 = arith.constant 0 : i32
    return %c0_i32, %c0_i32_0 : i32, i32
  }
  func.func @transform_3(%arg0: i32) -> (i32, i32) {
    %c0_i32 = arith.constant 0 : i32
    %c0_i32_0 = arith.constant 0 : i32
    %c0_i32_1 = arith.constant 0 : i32
    return %c0_i32, %c0_i32_0 : i32, i32
  }
  func.func @transform_4(%arg0: i32) -> (i32, i32) {
    %c0_i32 = arith.constant 0 : i32
    %c0_i32_0 = arith.constant 0 : i32
    %c0_i32_1 = arith.constant 0 : i32
    return %c0_i32, %c0_i32_0 : i32, i32
  }
  func.func @transform_5(%arg0: i32) -> (i32, i32) {
    %c0_i32 = arith.constant 0 : i32
    %c0_i32_0 = arith.constant 0 : i32
    %c0_i32_1 = arith.constant 0 : i32
    return %c0_i32, %c0_i32_0 : i32, i32
  }
  func.func @transform_6(%arg0: i32) -> (i32, i32) {
    %c0_i32 = arith.constant 0 : i32
    %c0_i32_0 = arith.constant 0 : i32
    %c0_i32_1 = arith.constant 0 : i32
    return %c0_i32, %c0_i32_0 : i32, i32
  }
  func.func @transform_7(%arg0: i32) -> (i32, i32) {
    %c0_i32 = arith.constant 0 : i32
    %c0_i32_0 = arith.constant 0 : i32
    %c0_i32_1 = arith.constant 0 : i32
    return %c0_i32, %c0_i32_0 : i32, i32
  }
  func.func @transform_8(%arg0: i32) -> (i32, i32) {
    %c0_i32 = arith.constant 0 : i32
    %c0_i32_0 = arith.constant 0 : i32
    %c0_i32_1 = arith.constant 0 : i32
    return %c0_i32, %c0_i32_0 : i32, i32
  }
  func.func @transform_9(%arg0: i32) -> (i32, i32) {
    %c0_i32 = arith.constant 0 : i32
    %c0_i32_0 = arith.constant 0 : i32
    %c0_i32_1 = arith.constant 0 : i32
    return %c0_i32, %c0_i32_0 : i32, i32
  }
  func.func @transform_10(%arg0: i32) -> (i32, i32) {
    %c0_i32 = arith.constant 0 : i32
    %c0_i32_0 = arith.constant 0 : i32
    %c0_i32_1 = arith.constant 0 : i32
    return %c0_i32, %c0_i32_0 : i32, i32
  }
  func.func @transform_11(%arg0: i32) -> (i32, i32) {
    %c0_i32 = arith.constant 0 : i32
    %c0_i32_0 = arith.constant 0 : i32
    %c0_i32_1 = arith.constant 0 : i32
    return %c0_i32, %c0_i32_0 : i32, i32
  }
  func.func @transform_12(%arg0: i32) -> (i32, i32, i32) {
    %c0_i32 = arith.constant 0 : i32
    %c0_i32_0 = arith.constant 0 : i32
    %c0_i32_1 = arith.constant 0 : i32
    return %arg0, %c0_i32, %c0_i32_0 : i32, i32, i32
  }
  func.func @transform_13(%arg0: i32) -> (i32, i32, i32) {
    %c0_i32 = arith.constant 0 : i32
    %c0_i32_0 = arith.constant 0 : i32
    %c0_i32_1 = arith.constant 0 : i32
    return %arg0, %c0_i32, %c0_i32_0 : i32, i32, i32
  }
}

module attributes {stable_mosaic.version = 11 : i64} {
  func.func @_upmax_kernel(%arg0: i32, %arg1: memref<8x16x16xf32, #tpu.memory_space<vmem>>, %arg2: memref<8x8x8xf32, #tpu.memory_space<vmem>>, %arg3: memref<8x12x12xf32, #tpu.memory_space<vmem>>, %arg4: memref<16x8xbf16, #tpu.memory_space<vmem>>, %arg5: memref<8x16xbf16, #tpu.memory_space<vmem>>, %arg6: memref<16x12xbf16, #tpu.memory_space<vmem>>, %arg7: memref<12x16xbf16, #tpu.memory_space<vmem>>, %arg8: memref<8x16x16xf32, #tpu.memory_space<vmem>>) attributes {dimension_semantics = [#tpu.dimension_semantics<parallel>], iteration_bounds = array<i64: 2>, scalar_prefetch = 0 : i64, scratch_operands = 0 : i64, tpu.core_type = #tpu.core_type<tc>, window_params = [{transform_indices = @transform_0, window_bounds = array<i64: 8, 16, 16>}, {transform_indices = @transform_1, window_bounds = array<i64: 8, 8, 8>}, {transform_indices = @transform_2, window_bounds = array<i64: 8, 12, 12>}, {pipeline_mode = #tpu.pipeline_mode<synchronous>, transform_indices = @transform_3, window_bounds = array<i64: 16, 8>}, {pipeline_mode = #tpu.pipeline_mode<synchronous>, transform_indices = @transform_4, window_bounds = array<i64: 8, 16>}, {pipeline_mode = #tpu.pipeline_mode<synchronous>, transform_indices = @transform_5, window_bounds = array<i64: 16, 12>}, {pipeline_mode = #tpu.pipeline_mode<synchronous>, transform_indices = @transform_6, window_bounds = array<i64: 12, 16>}, {transform_indices = @transform_7, window_bounds = array<i64: 8, 16, 16>}]} {
    %c0 = arith.constant 0 : index
    %c0_0 = arith.constant 0 : index
    %c0_1 = arith.constant 0 : index
    %0 = vector.load %arg1[%c0, %c0_0, %c0_1] : memref<8x16x16xf32, #tpu.memory_space<vmem>>, vector<8x16x16xf32>
    %c0_2 = arith.constant 0 : index
    %c0_3 = arith.constant 0 : index
    %c0_4 = arith.constant 0 : index
    %1 = vector.load %arg2[%c0_2, %c0_3, %c0_4] : memref<8x8x8xf32, #tpu.memory_space<vmem>>, vector<8x8x8xf32>
    %2 = arith.truncf %1 : vector<8x8x8xf32> to vector<8x8x8xbf16>
    %c0_5 = arith.constant 0 : index
    %c0_6 = arith.constant 0 : index
    %3 = vector.load %arg5[%c0_5, %c0_6] : memref<8x16xbf16, #tpu.memory_space<vmem>>, vector<8x16xbf16>
    %4 = vector.shape_cast %3 : vector<8x16xbf16> to vector<1x8x16xbf16>
    %5 = vector.broadcast %4 : vector<1x8x16xbf16> to vector<8x8x16xbf16>
    %c0_7 = arith.constant 0 : index
    %c0_8 = arith.constant 0 : index
    %6 = vector.load %arg4[%c0_7, %c0_8] : memref<16x8xbf16, #tpu.memory_space<vmem>>, vector<16x8xbf16>
    %7 = vector.shape_cast %6 : vector<16x8xbf16> to vector<1x16x8xbf16>
    %8 = vector.broadcast %7 : vector<1x16x8xbf16> to vector<8x16x8xbf16>
    "tpu.trace_start"() <{level = 10 : i32, message = "bhw,bwj->bhj"}> : () -> ()
    %cst = arith.constant dense<0.000000e+00> : vector<8x8x16xf32>
    %9 = tpu.matmul %2, %5, %cst {dimension_numbers = #tpu.dot_dimension_numbers<[2], [1], [1], [2], [0, 0, 0, 1, 1, 2], [0], [0]>} : vector<8x8x8xbf16>, vector<8x8x16xbf16>, vector<8x8x16xf32> -> vector<8x8x16xf32>
    "tpu.trace_stop"() : () -> ()
    %10 = arith.truncf %9 : vector<8x8x16xf32> to vector<8x8x16xbf16>
    "tpu.trace_start"() <{level = 10 : i32, message = "bih,bhj->bij"}> : () -> ()
    %cst_9 = arith.constant dense<0.000000e+00> : vector<8x16x16xf32>
    %11 = tpu.matmul %8, %10, %cst_9 {dimension_numbers = #tpu.dot_dimension_numbers<[2], [1], [1], [2], [0, 0, 0, 1, 1, 2], [0], [0]>} : vector<8x16x8xbf16>, vector<8x8x16xbf16>, vector<8x16x16xf32> -> vector<8x16x16xf32>
    "tpu.trace_stop"() : () -> ()
    %12 = arith.maximumf %0, %11 : vector<8x16x16xf32>
    %c0_10 = arith.constant 0 : index
    %c0_11 = arith.constant 0 : index
    %c0_12 = arith.constant 0 : index
    %13 = vector.load %arg3[%c0_10, %c0_11, %c0_12] : memref<8x12x12xf32, #tpu.memory_space<vmem>>, vector<8x12x12xf32>
    %14 = arith.truncf %13 : vector<8x12x12xf32> to vector<8x12x12xbf16>
    %c0_13 = arith.constant 0 : index
    %c0_14 = arith.constant 0 : index
    %15 = vector.load %arg7[%c0_13, %c0_14] : memref<12x16xbf16, #tpu.memory_space<vmem>>, vector<12x16xbf16>
    %16 = vector.shape_cast %15 : vector<12x16xbf16> to vector<1x12x16xbf16>
    %17 = vector.broadcast %16 : vector<1x12x16xbf16> to vector<8x12x16xbf16>
    %c0_15 = arith.constant 0 : index
    %c0_16 = arith.constant 0 : index
    %18 = vector.load %arg6[%c0_15, %c0_16] : memref<16x12xbf16, #tpu.memory_space<vmem>>, vector<16x12xbf16>
    %19 = vector.shape_cast %18 : vector<16x12xbf16> to vector<1x16x12xbf16>
    %20 = vector.broadcast %19 : vector<1x16x12xbf16> to vector<8x16x12xbf16>
    "tpu.trace_start"() <{level = 10 : i32, message = "bhw,bwj->bhj"}> : () -> ()
    %cst_17 = arith.constant dense<0.000000e+00> : vector<8x12x16xf32>
    %21 = tpu.matmul %14, %17, %cst_17 {dimension_numbers = #tpu.dot_dimension_numbers<[2], [1], [1], [2], [0, 0, 0, 1, 1, 2], [0], [0]>} : vector<8x12x12xbf16>, vector<8x12x16xbf16>, vector<8x12x16xf32> -> vector<8x12x16xf32>
    "tpu.trace_stop"() : () -> ()
    %22 = arith.truncf %21 : vector<8x12x16xf32> to vector<8x12x16xbf16>
    "tpu.trace_start"() <{level = 10 : i32, message = "bih,bhj->bij"}> : () -> ()
    %cst_18 = arith.constant dense<0.000000e+00> : vector<8x16x16xf32>
    %23 = tpu.matmul %20, %22, %cst_18 {dimension_numbers = #tpu.dot_dimension_numbers<[2], [1], [1], [2], [0, 0, 0, 1, 1, 2], [0], [0]>} : vector<8x16x12xbf16>, vector<8x12x16xbf16>, vector<8x16x16xf32> -> vector<8x16x16xf32>
    "tpu.trace_stop"() : () -> ()
    %24 = arith.maximumf %12, %23 : vector<8x16x16xf32>
    %c0_19 = arith.constant 0 : index
    %c0_20 = arith.constant 0 : index
    %c0_21 = arith.constant 0 : index
    %25 = vector.load %arg8[%c0_19, %c0_20, %c0_21] : memref<8x16x16xf32, #tpu.memory_space<vmem>>, vector<8x16x16xf32>
    tpu.vector_store %arg8[%c0_19, %c0_20, %c0_21], %24 {strides = array<i32>} : memref<8x16x16xf32, #tpu.memory_space<vmem>>, vector<8x16x16xf32>,
    return
  }
  func.func @transform_0(%arg0: i32) -> (i32, i32, i32) {
    %c0_i32 = arith.constant 0 : i32
    %c0_i32_0 = arith.constant 0 : i32
    %c0_i32_1 = arith.constant 0 : i32
    return %arg0, %c0_i32, %c0_i32_0 : i32, i32, i32
  }
  func.func @transform_1(%arg0: i32) -> (i32, i32, i32) {
    %c0_i32 = arith.constant 0 : i32
    %c0_i32_0 = arith.constant 0 : i32
    %c0_i32_1 = arith.constant 0 : i32
    return %arg0, %c0_i32, %c0_i32_0 : i32, i32, i32
  }
  func.func @transform_2(%arg0: i32) -> (i32, i32, i32) {
    %c0_i32 = arith.constant 0 : i32
    %c0_i32_0 = arith.constant 0 : i32
    %c0_i32_1 = arith.constant 0 : i32
    return %arg0, %c0_i32, %c0_i32_0 : i32, i32, i32
  }
  func.func @transform_3(%arg0: i32) -> (i32, i32) {
    %c0_i32 = arith.constant 0 : i32
    %c0_i32_0 = arith.constant 0 : i32
    %c0_i32_1 = arith.constant 0 : i32
    return %c0_i32, %c0_i32_0 : i32, i32
  }
  func.func @transform_4(%arg0: i32) -> (i32, i32) {
    %c0_i32 = arith.constant 0 : i32
    %c0_i32_0 = arith.constant 0 : i32
    %c0_i32_1 = arith.constant 0 : i32
    return %c0_i32, %c0_i32_0 : i32, i32
  }
  func.func @transform_5(%arg0: i32) -> (i32, i32) {
    %c0_i32 = arith.constant 0 : i32
    %c0_i32_0 = arith.constant 0 : i32
    %c0_i32_1 = arith.constant 0 : i32
    return %c0_i32, %c0_i32_0 : i32, i32
  }
  func.func @transform_6(%arg0: i32) -> (i32, i32) {
    %c0_i32 = arith.constant 0 : i32
    %c0_i32_0 = arith.constant 0 : i32
    %c0_i32_1 = arith.constant 0 : i32
    return %c0_i32, %c0_i32_0 : i32, i32
  }
  func.func @transform_7(%arg0: i32) -> (i32, i32, i32) {
    %c0_i32 = arith.constant 0 : i32
    %c0_i32_0 = arith.constant 0 : i32
    %c0_i32_1 = arith.constant 0 : i32
    return %arg0, %c0_i32, %c0_i32_0 : i32, i32, i32
  }
}

</mosaic_0001>

<bundles_post_ra>
// kernel: mscc_forward.3
= control target key start
LH: loop header
LB: loop body
LE: loop exit
PB: predicated region body
PF: predicated region fallthrough
CT: control target
= control target key end

     0   :  { %s802_s21 = smov 0   ;;  %s804_s22 = smov 0   ;;  %s886_s0 = inlined_call_operand.vmem [shape: bf16[2,4,256], index: 0, kind: input, shape index: {}]   ;;  %s887_s1 = inlined_call_operand.vmem [shape: bf16[2,1,256], index: 1, kind: input, shape index: {}]   ;;  %s888_s2 = inlined_call_operand.vmem [shape: bf16[16,4], index: 2, kind: input, shape index: {}]   ;;  %s889_s3 = inlined_call_operand.vmem [shape: f32[16,1], index: 3, kind: input, shape index: {}]   ;;  %s890_s4 = inlined_call_operand.vmem [shape: f32[2,8,256], index: 4, kind: output, shape index: {0}]   ;;  %s891_s5 = inlined_call_operand.vmem [shape: f32[2,8,256], index: 5, kind: output, shape index: {1}]   ;;  %s892_s6 = inlined_call_operand.vmem [shape: f32[4,8,128], index: 6, kind: output, shape index: {2}]  }
   0x1   :  { %s806_s23 = smov 0   ;;  %s808_s24 = smov 0  }
   0x2   :  { %s810_s25 = smov 0  }
   0x3 LB: > { %s26_s26 = sadd.s32 1, %s753_s23  ;;  %s29_s27 = sadd.s32 1, %s757_s24  ;;  %s761_s25 = sphi %s810_s25, %s17_s25   ;;  %s757_s24 = sphi %s808_s24, %s896_s24   ;;  %s753_s23 = sphi %s806_s23, %s895_s23   ;;  %s749_s22 = sphi %s804_s22, %s894_s22   ;;  %s745_s21 = sphi %s802_s21, %s893_s21  }
   0x4   : > { %p27_p0 = scmp.ge.s32.totalorder %s26_s26, 2  ;;  %p635_p1 = scmp.ge.s32.totalorder %s761_s25, 1 }
   0x5   : > { %p256_p2 = scmp.lt.s32.totalorder %s761_s25, 5 }
   0x6   : > { %s898_s26 = smov (%p27_p0, %s26_s26), 0  ;;  %s900_s27 = smov (!%p27_p0, %s29_s27), %s757_s24 }
   0x7   : > { %p257_p3 = pnand %p635_p1, %p256_p2  ;;  %p31_p4 = scmp.ge.s32.totalorder %s900_s27, 2 }
   0x8   : > { %p313_p5 = scmp.lt.s32.totalorder (!%p257_p3), %s749_s22, 1  ;;  %p315_p6 = scmp.lt.s32.totalorder (!%p257_p3), %s745_s21, 1 }
   0x9   : > { %s902_s27 = smov (%p31_p4, %s900_s27), 0  ;;  %260 = sbr.rel (%p257_p3) target bundleno = 339 (0x153), region = 36 }
   0xe   : > { %v648_v0 = vld [vmem:[%s888_s2] sm:$0xff]   ;;  %v763_v2 = vmov 0   ;;  %v764_v5 = vmov 2   ;;  %v415_v7 = vld [vmem:[%s889_s3 + $0x8] sm:$0xff]  ;;  %v765_v8 = vmov 1   ;;  %v766_v9 = vmov 3  }
   0xf   : > { %v414_v1 = vld [vmem:[%s889_s3] sm:$0xff]  ;;  %697 = vset.pattern.permute.xlu0 %v763_v2  ;;  %v649_v3 = vunpack.c.l.bf16 %v648_v0  ;;  %v650_v4 = vunpack.c.h.bf16 %v648_v0  ;;  %709 = vset.pattern.permute.xlu1 %v764_v5  ;;  %s314_s10 = scalar_select %p313_p5, %s749_s22, 1 }
  0x10   : > { %721 = vset.pattern.permute.xlu2 %v763_v2  ;;  %s316_s11 = scalar_select %p315_p6, %s745_s21, 1 }
  0x11   : > { %v698_v6 = vpack.i.bf16 %v650_v4, %v649_v3  ;;  %418 = vperm.xlu2 %721, %v414_v1   ;;  %s636_s12 = sshll.u32 %s314_s10, 1 }
  0x12   : > { %s849_s13 = sadd.s32 %s636_s12, %s316_s11  ;;  %s643_s11 = sshll.u32 %s749_s22, 1 }
  0x13   : > { %699 = vperm.xlu0 %697, %v698_v6   ;;  %711 = vperm.xlu1 %709, %v698_v6   ;;  %s327_s16 = scalar_lea.vmem %s887_s1, %s849_s13  ;;  %s637_s17 = sshll.u32 %s849_s13, 1 }
  0x14   : > { %v354_v10 = vld [vmem:[%s327_s16] sm:$0x1]  ;;  %s320_s20 = scalar_lea.vmem %s886_s0, %s637_s17  ;;  %s640_s28 = sshll.u32 %s849_s13, 3 }
  0x15   : > { %v355_v11 = vunpack.c.l.bf16 %v354_v10  ;;  %v352_v12 = vld [vmem:[%s320_s20] sm:$0x3]  ;;  %s343_s7 = scalar_lea.vmem %s891_s5, %s640_s28  ;;  %s335_s10 = scalar_lea.vmem %s890_s4, %s640_s28 }
  0x16   : > { %v353_v14 = vunpack.c.l.bf16 %v352_v12  ;;  %s345_s12 = sadd.s32 %s745_s21, %s643_s11 }
  0x17   : > { %v356_v15 = vperm.slane %v355_v11, 0  ;;  %p346_p7 = scmp.lt.s32.totalorder %s345_s12, 3 }
  0x19   : > { %423 = vperm.xlu2 %721, %v415_v7   ;;  %v357_v17 = vmul.f32 %v356_v15, %v353_v14  ;;  %s904_s12 = smov (!%p346_p7, %s345_s12), 3 }
  0x1a   : > { %s644_s13 = sshll.u32 %s904_s12, 3 }
  0x1b   : > { %703 = vset.pattern.permute.xlu0 %v765_v8  ;;  %715 = vset.pattern.permute.xlu1 %v766_v9  ;;  %v372_v20 = vperm.slane %v357_v17, 0  ;;  %v383_v22 = vperm.slane %v357_v17, 1  ;;  %v396_v25 = vperm.slane %v357_v17, 2  ;;  %v409_v28 = vperm.slane %v357_v17, 3  ;;  %s349_s16 = scalar_lea.vmem %s892_s6, %s644_s13 }
  0x1c   : > { %705 = vperm.xlu0 %703, %v698_v6   ;;  %717 = vperm.xlu1 %715, %v698_v6  }
  0x24   : > { %722 = vset.pattern.permute.xlu0 %v763_v2 }
  0x6b   : > { %v419_v21 = vpop.permute.xlu2 %418 }
  0x73   : > { %v424_v47 = vpop.permute.xlu2 %423 }
  0x85   : > { %v700_v13 = vpop.permute.xlu0 %699  ;;  %v712_v16 = vpop.permute.xlu1 %711 }
  0x86   : > { %v702_v18 = vunpack.i.h.bf16 %v700_v13  ;;  %v701_v19 = vunpack.i.l.bf16 %v700_v13  ;;  %v714_v23 = vunpack.i.h.bf16 %v712_v16  ;;  %v713_v24 = vunpack.i.l.bf16 %v712_v16 }
  0x88   : > { %v373_v33 = vmul.f32 %v701_v19, %v372_v20  ;;  %v374_v34 = vmul.f32 %v702_v18, %v372_v20  ;;  %v397_v37 = vmul.f32 %v713_v24, %v396_v25  ;;  %v398_v38 = vmul.f32 %v714_v23, %v396_v25 }
  0x8e   : > { %v706_v26 = vpop.permute.xlu0 %705  ;;  %v718_v27 = vpop.permute.xlu1 %717 }
  0x8f   : > { %v708_v29 = vunpack.i.h.bf16 %v706_v26  ;;  %v707_v30 = vunpack.i.l.bf16 %v706_v26  ;;  %v720_v31 = vunpack.i.h.bf16 %v718_v27  ;;  %v719_v32 = vunpack.i.l.bf16 %v718_v27 }
  0x91   : > { %v384_v35 = vmul.f32 %v707_v30, %v383_v22  ;;  %v385_v36 = vmul.f32 %v708_v29, %v383_v22  ;;  %v410_v41 = vmul.f32 %v719_v32, %v409_v28  ;;  %v411_v42 = vmul.f32 %v720_v31, %v409_v28 }
  0x93   : > { %v386_v39 = vadd.f32 %v384_v35, %v373_v33  ;;  %v387_v40 = vadd.f32 %v385_v36, %v374_v34 }
  0x95   : > { %v399_v43 = vadd.f32 %v397_v37, %v386_v39  ;;  %v400_v44 = vadd.f32 %v398_v38, %v387_v40 }
  0x97   : > { %v412_v45 = vadd.f32 %v410_v41, %v399_v43  ;;  %v413_v46 = vadd.f32 %v411_v42, %v400_v44 }
  0x99   : > { %v426_v48 = vadd.f32 %v419_v21, %v412_v45  ;;  %v427_v49 = vadd.f32 %v424_v47, %v413_v46 }
  0x9b   : > { %429 = vst [vmem:[%s343_s7] sm:$0xff] %v427_v49  ;;  %v430_v50 = vsub.f32 %v426_v48, %v427_v49 }
  0x9c   : > { %428 = vst [vmem:[%s335_s10] sm:$0xff] %v426_v48 }
  0x9d   : > { %v431_v51 = vmul.f32 %v430_v50, %v430_v50 }
  0x9f   : > { %432 = vadd.xlane.f32.xlu1 %v431_v51 }
 0x112   : > { %v433_v52 = vpop.xlane.xlu1 %432 }
 0x113   : > { %v434_v53 = vrot.slane %v433_v52, 4 }
 0x115   : > { %v435_v54 = vadd.f32 %v434_v53, %v433_v52 }
 0x117   : > { %v436_v55 = vrot.slane %v435_v54, 2 }
 0x119   : > { %v437_v56 = vadd.f32 %v436_v55, %v435_v54 }
 0x11b   : > { %v438_v57 = vrot.slane %v437_v56, 1 }
 0x11d   : > { %v439_v58 = vadd.f32 %v438_v57, %v437_v56 }
 0x11f   : > { %651 = vpush %v439_v58 }
 0x150   : > { %s652_s17 = spop %651 }
 0x151   : > { %v441_v59 = vstv %s652_s17 }
 0x152   : > { %442 = vst [vmem:[%s349_s16] sm:$0xff] %v441_v59 }
 0x153 PF: > { %s17_s25 = sadd.s32 1, %s761_s25   ;;  %s893_s21 = smov %s753_s23 }
 0x154   : > { %p14_p8 = scmp.ge.s32.totalorder %s17_s25, 6   ;;  %s894_s22 = smov %s757_s24 }
 0x155   : > { %s895_s23 = smov %s898_s26  ;;  %s896_s24 = smov %s902_s27 }
 0x156   :  { %16 = sbr.rel (!%p14_p8) target bundleno = 3 (0x3), region = 93 }

// kernel: mscc_forward.4
= control target key start
LH: loop header
LB: loop body
LE: loop exit
PB: predicated region body
PF: predicated region fallthrough
CT: control target
= control target key end

     0   :  { %s1559_s25 = smov 0   ;;  %s1801_s0 = inlined_call_operand.vmem [shape: bf16[2,64,16], index: 0, kind: input, shape index: {}]   ;;  %s1802_s1 = inlined_call_operand.vmem [shape: bf16[2,16,16], index: 1, kind: input, shape index: {}]   ;;  %s1803_s2 = inlined_call_operand.vmem [shape: bf16[16,8], index: 2, kind: input, shape index: {}, may-alias: {2,5}]   ;;  %s1804_s3 = inlined_call_operand.vmem [shape: bf16[64,64], index: 3, kind: input, shape index: {}]   ;;  %s1805_s4 = inlined_call_operand.vmem [shape: bf16[64,16], index: 4, kind: input, shape index: {}]   ;;  %s1806_s5 = inlined_call_operand.vmem [shape: bf16[16,8], index: 5, kind: input, shape index: {}, may-alias: {2,5}]   ;;  %s1807_s6 = inlined_call_operand.vmem [shape: f32[64,1], index: 6, kind: input, shape index: {}]   ;;  %s1808_s7 = inlined_call_operand.vmem [shape: bf16[16,12], index: 7, kind: input, shape index: {}, may-alias: {7,10}]   ;;  %s1809_s8 = inlined_call_operand.vmem [shape: bf16[96,64], index: 8, kind: input, shape index: {}]   ;;  %s1810_s9 = inlined_call_operand.vmem [shape: bf16[96,16], index: 9, kind: input, shape index: {}]   ;;  %s1811_s10 = inlined_call_operand.vmem [shape: bf16[16,12], index: 10, kind: input, shape index: {}, may-alias: {7,10}]   ;;  %s1812_s11 = inlined_call_operand.vmem [shape: f32[96,1], index: 11, kind: input, shape index: {}]   ;;  %s1813_s12 = inlined_call_operand.vmem [shape: f32[2,64,8], index: 12, kind: output, shape index: {0}]   ;;  %s1814_s13 = inlined_call_operand.vmem [shape: f32[2,96,12], index: 13, kind: output, shape index: {1}]  }
   0x1 LB: > { %s1273_s26 = sadd.s32 4294967295, %s1486_s25   ;;  %p1277_p0 = scmp.ge.s32.totalorder %s1486_s25, 1  ;;  %s1486_s25 = sphi %s1559_s25, %s24_s25  }
   0x2   : > { %p400_p1 = scmp.lt.s32.totalorder %s1486_s25, 3 }
   0x4   : > { %p401_p2 = pnand %p1277_p0, %p400_p1 }
   0x5   : > { %p454_p3 = scmp.lt.s32.totalorder (!%p401_p2), %s1273_s26, 1 }
   0x6   : > { %404 = sbr.rel (%p401_p2) target bundleno = 547 (0x223), region = 68 }
   0xb   : > { %v1441_v0 = vld [vmem:[%s1803_s2] sm:$0xff]  ;;  %s1816_s26 = smov (!%p454_p3, %s1273_s26), 1  ;;  %vm513_vm0 = vcmask 130048   ;;  %v1448_v18 = vld [vmem:[%s1805_s4 + $0x8] sm:$0xff]  ;;  %v1488_v21 = vmov 0   ;;  %v1449_v29 = vld [vmem:[%s1805_s4 + $0x10] sm:$0xff] }
   0xc   : > { %v1446_v1 = vld [vmem:[%s1806_s5] sm:$0xff]  ;;  %1465 = vmatpush.bf16.msra.mxu3 %v1441_v0  ;;  %533 = vmatpush.bf16.msra.mxu0 %v1441_v0  ;;  %s1433_s14 = sshll.u32 %s1816_s26, 5  ;;  %s1434_s18 = sshll.u32 %s1816_s26, 3  ;;  %v738_v31 = vld [vmem:[%s1807_s6 + $0x8] sm:$0xff]  ;;  %v739_v32 = vld [vmem:[%s1807_s6 + $0x10] sm:$0xff]  ;;  %vm587_vm1 = vcmask 523264  }
   0xd   : > { %652 = vmatpush.bf16.msra.mxu2 %v1446_v1  ;;  %s458_s17 = scalar_lea.vmem %s1801_s0, %s1433_s14  ;;  %s463_s21 = scalar_lea.vmem %s1802_s1, %s1434_s18  ;;  %v1451_v5 = vld [vmem:[%s1808_s7] sm:$0xff]  ;;  %1477 = vset.pattern.permute.xlu0 %v1488_v21  ;;  %v740_v38 = vld [vmem:[%s1807_s6 + $0x18] sm:$0xff]  ;;  %v1443_v41 = vld [vmem:[%s1804_s3 + $0x8] sm:$0xff]  ;;  %vm793_vm2 = vcmask 64512   ;;  %vm1160_vm3 = vcmask 97280  }
   0xe   : > { %v1437_v2 = vld [vmem:[%s458_s17 + $0x8] sm:$0xff]  ;;  %v1583_v3 = vld [vmem:[%s463_s21] sm:$0xff]  ;;  %v1438_v6 = vld [vmem:[%s458_s17 + $0x10] sm:$0xff]  ;;  %1478 = vset.pattern.permute.xlu1 %v1488_v21  ;;  %1479 = vset.pattern.permute.xlu2 %v1488_v21  ;;  %s1435_s23 = sshll.u32 %s1816_s26, 6 }
   0xf   : > { %1306 = vmatmul.msk.bf16.vlgmr.msra.gmra.mxu3 %vm513_vm0, %v1437_v2  ;;  %v1436_v4 = vld [vmem:[%s458_s17] sm:$0xff]  ;;  %v1439_v7 = vld [vmem:[%s458_s17 + $0x18] sm:$0xff]  ;;  %757 = vperm.xlu1 %1478, %v739_v32   ;;  %v743_v43 = vld [vmem:[%s1807_s6 + $0x30] sm:$0xff]  ;;  %s1684_s28 = scalar_lea.vmem %s1813_s12, %s1435_s23 }
  0x10   : > { %1337 = vmatmul.msk.bf16.vlgmr.msra.gmra.mxu2 %vm513_vm0, %v1583_v3  ;;  %1305 = vmatmul.msk.bf16.vlgmr.msra.gmra.mxu0 %vm513_vm0, %v1436_v4  ;;  %v1447_v13 = vld [vmem:[%s1805_s4] sm:$0xff]  ;;  %v1450_v39 = vld [vmem:[%s1805_s4 + $0x18] sm:$0xff]  ;;  %v742_v49 = vld [vmem:[%s1807_s6 + $0x28] sm:$0xff] }
  0x11   : > { %817 = vmatpush.bf16.msrb.mxu2 %v1451_v5  ;;  %v737_v19 = vld [vmem:[%s1807_s6] sm:$0xff]  ;;  %v744_v45 = vld [vmem:[%s1807_s6 + $0x38] sm:$0xff]  ;;  %v1444_v51 = vld [vmem:[%s1804_s3 + $0x10] sm:$0xff] }
  0x12   : > { %747 = vperm.xlu0 %1477, %v737_v19   ;;  %v1458_v27 = vld [vmem:[%s1811_s10] sm:$0xff]  ;;  %v1445_v52 = vld [vmem:[%s1804_s3 + $0x18] sm:$0xff]  ;;  %v1453_v56 = vld [vmem:[%s1809_s8 + $0x8] sm:$0xff] }
  0x13   : > { %v1442_v36 = vld [vmem:[%s1804_s3] sm:$0xff]  ;;  %v1454_v59 = vld [vmem:[%s1809_s8 + $0x10] sm:$0xff]  ;;  %v1077_v61 = vld [vmem:[%s1812_s11 + $0x8] sm:$0xff] }
  0x14   : > { %v741_v44 = vld [vmem:[%s1807_s6 + $0x20] sm:$0xff]  ;;  %v1078_v62 = vld [vmem:[%s1812_s11 + $0x10] sm:$0xff]  ;;  %v1087_v19 = vld [vmem:[%s1812_s11 + $0x58] sm:$0xff] }
  0x15   : > { %767 = vperm.xlu2 %1479, %v741_v44   ;;  %v1452_v53 = vld [vmem:[%s1809_s8] sm:$0xff] }
  0x16   : > { %v1080_v5 = vld [vmem:[%s1812_s11 + $0x20] sm:$0xff] }
  0x17   : > { %762 = vperm.xlu1 %1478, %v740_v38   ;;  %v1456_v21 = vld [vmem:[%s1809_s8 + $0x20] sm:$0xff] }
  0x1a   : > { %752 = vperm.xlu0 %1477, %v738_v31  }
  0x1d   : > { %772 = vperm.xlu2 %1479, %v742_v49   ;;  %v1463_v49 = vld [vmem:[%s1810_s9 + $0x20] sm:$0xff] }
  0x1f   : > { %1307 = vmatmul.msk.bf16.gmra.mxu3 %vm513_vm0, %v1438_v6  ;;  %782 = vperm.xlu1 %1478, %v744_v45  }
  0x20   : > { %1362 = vmatmul.msk.bf16.vlgmr.msrb.gmra.mxu2 %vm513_vm0, %v1436_v4  ;;  %v1081_v4 = vld [vmem:[%s1812_s11 + $0x28] sm:$0xff] }
  0x22   : > { %777 = vperm.xlu0 %1477, %v743_v43  }
  0x27   : > { %1100 = vperm.xlu1 %1478, %v1078_v62  }
  0x2a   : > { %1095 = vperm.xlu0 %1477, %v1077_v61  }
  0x2f   : > { %1308 = vmatmul.msk.bf16.gmra.mxu3 %vm513_vm0, %v1439_v7  ;;  %1115 = vperm.xlu1 %1478, %v1081_v4  }
  0x30   : > { %1363 = vmatmul.msk.bf16.gmra.mxu2 %vm513_vm0, %v1437_v2 }
  0x32   : > { %1110 = vperm.xlu0 %1477, %v1080_v5  }
  0x40   : > { %1364 = vmatmul.msk.bf16.gmra.mxu2 %vm513_vm0, %v1438_v6  ;;  %v1455_v6 = vld [vmem:[%s1809_s8 + $0x18] sm:$0xff] }
  0x50   : > { %1365 = vmatmul.msk.bf16.gmra.mxu2 %vm513_vm0, %v1439_v7 }
  0x84   : > { %v748_v63 = vpop.permute.xlu0 %747 }
  0x8d   : > { %v535_v23 = vpop.f32.mrf.mxu0 }
  0x92   : > { %v540_v8 = vpop.f32.mrf.mxu3 }
  0x93   : > { %v654_v9 = vpop.f32.mrf.mxu2 }
  0x95   : > { %v537_v33 = vpop.f32.mrf.mxu0 }
  0x96   : > { %v563_v35 = vpack.c.bf16 %v537_v33, %v535_v23  ;;  %v1079_v33 = vld [vmem:[%s1812_s11 + $0x18] sm:$0xff] }
  0x9a   : > { %v542_v10 = vpop.f32.mrf.mxu3 }
  0x9b   : > { %v656_v11 = vpop.f32.mrf.mxu2  ;;  %v564_v30 = vpack.c.bf16 %v542_v10, %v540_v8  ;;  %v753_v8 = vpop.permute.xlu0 %752 }
  0x9c   : > { %v667_v12 = vpack.c.bf16 %v656_v11, %v654_v9 }
  0x9e   : > { %707 = vmatpush.bf16.msrb.mxu3 %v667_v12  ;;  %v1084_v12 = vld [vmem:[%s1812_s11 + $0x40] sm:$0xff] }
  0x9f   : > { %1130 = vperm.xlu1 %1478, %v1084_v12  }
  0xa1   : > { %1354 = vmatmul.msk.bf16.vlgmr.msrb.gmra.mxu3 %vm513_vm0, %v1447_v13  ;;  %v1083_v13 = vld [vmem:[%s1812_s11 + $0x38] sm:$0xff] }
  0xa2   : > { %v545_v14 = vpop.f32.mrf.mxu3  ;;  %957 = vmatpush.bf16.msra.mxu3 %v1458_v27  ;;  %1125 = vperm.xlu0 %1477, %v1083_v13   ;;  %v1076_v27 = vld [vmem:[%s1812_s11] sm:$0xff] }
  0xa3   : > { %v1602_v15 = vpop.f32.mrf.mxu2  ;;  %1090 = vperm.xlu2 %1479, %v1076_v27   ;;  %v778_v44 = vpop.permute.xlu0 %777 }
  0xa7   : > { %1145 = vperm.xlu1 %1478, %v1087_v19  }
  0xaa   : > { %v547_v16 = vpop.f32.mrf.mxu3 }
  0xab   : > { %v821_v17 = vpop.f32.mrf.mxu2  ;;  %v565_v28 = vpack.c.bf16 %v547_v16, %v545_v14  ;;  %v758_v14 = vpop.permute.xlu1 %757  ;;  %1105 = vperm.xlu2 %1479, %v1079_v33  }
  0xac   : > { %v851_v50 = vpack.c.bf16 %v821_v17, %v1602_v15 }
  0xb1   : > { %1355 = vmatmul.msk.bf16.gmra.mxu3 %vm513_vm0, %v1448_v18 }
  0xb2   : > { %v550_v20 = vpop.f32.mrf.mxu3 }
  0xb3   : > { %v824_v22 = vpop.f32.mrf.mxu2  ;;  %v763_v23 = vpop.permute.xlu1 %762 }
  0xba   : > { %v552_v24 = vpop.f32.mrf.mxu3 }
  0xbb   : > { %v566_v25 = vpack.c.bf16 %v552_v24, %v550_v20  ;;  %v826_v26 = vpop.f32.mrf.mxu2  ;;  %v1086_v20 = vld [vmem:[%s1812_s11 + $0x50] sm:$0xff] }
  0xbc   : > { %v852_v48 = vpack.c.bf16 %v826_v26, %v824_v22  ;;  %1140 = vperm.xlu0 %1477, %v1086_v20  }
  0xbd   : > { %604 = vmatpush.bf16.msra.mxu1 %v566_v25 }
  0xc1   : > { %1356 = vmatmul.msk.bf16.gmra.mxu3 %vm513_vm0, %v1449_v29  ;;  %605 = vmatpush.bf16.msra.mxu1 %v565_v28  ;;  %v768_v28 = vpop.permute.xlu2 %767 }
  0xc3   : > { %v829_v34 = vpop.f32.mrf.mxu2 }
  0xc5   : > { %606 = vmatpush.bf16.msra.mxu1 %v564_v30 }
  0xc9   : > { %607 = vmatpush.bf16.msra.mxu1 %v563_v35  ;;  %v1459_v35 = vld [vmem:[%s1810_s9] sm:$0xff] }
  0xcb   : > { %v831_v37 = vpop.f32.mrf.mxu2 }
  0xcc   : > { %1325 = vmatmul.msk.bf16.vlgmr.msra.gmra.mxu1 %vm587_vm1, %v1442_v36  ;;  %v853_v47 = vpack.c.bf16 %v831_v37, %v829_v34  ;;  %v1462_v36 = vld [vmem:[%s1810_s9 + $0x18] sm:$0xff]  ;;  %v1457_v37 = vld [vmem:[%s1809_s8 + $0x28] sm:$0xff] }
  0xd1   : > { %1357 = vmatmul.msk.bf16.gmra.mxu3 %vm513_vm0, %v1450_v39  ;;  %v773_v39 = vpop.permute.xlu2 %772 }
  0xd3   : > { %v834_v40 = vpop.f32.mrf.mxu2 }
  0xdb   : > { %v836_v42 = vpop.f32.mrf.mxu2 }
  0xdc   : > { %1326 = vmatmul.msk.bf16.gmra.mxu1 %vm587_vm1, %v1443_v41  ;;  %v854_v46 = vpack.c.bf16 %v836_v42, %v834_v40  ;;  %v1082_v41 = vld [vmem:[%s1812_s11 + $0x30] sm:$0xff] }
  0xdd   : > { %1120 = vperm.xlu2 %1479, %v1082_v41  }
  0xde   : > { %907 = vmatpush.bf16.msrb.mxu0 %v854_v46 }
  0xe1   : > { %1400 = vmatmul.msk.bf16.vlgmr.msra.gmra.mxu3 %vm513_vm0, %v1583_v3 }
  0xe2   : > { %908 = vmatpush.bf16.msrb.mxu0 %v853_v47  ;;  %v1085_v47 = vld [vmem:[%s1812_s11 + $0x48] sm:$0xff] }
  0xe5   : > { %1135 = vperm.xlu2 %1479, %v1085_v47  }
  0xe6   : > { %909 = vmatpush.bf16.msrb.mxu0 %v852_v48  ;;  %v1460_v48 = vld [vmem:[%s1810_s9 + $0x8] sm:$0xff] }
  0xea   : > { %910 = vmatpush.bf16.msrb.mxu0 %v851_v50 }
  0xec   : > { %1327 = vmatmul.msk.bf16.gmra.mxu1 %vm587_vm1, %v1444_v51  ;;  %v783_v51 = vpop.permute.xlu1 %782 }
  0xed   : > { %1390 = vmatmul.msk.bf16.vlgmr.msrb.gmra.mxu0 %vm587_vm1, %v1452_v53 }
  0xf4   : > { %v1101_v5 = vpop.permute.xlu1 %1100 }
  0xfc   : > { %1328 = vmatmul.msk.bf16.gmra.mxu1 %vm587_vm1, %v1445_v52 }
  0xfd   : > { %1391 = vmatmul.msk.bf16.gmra.mxu0 %vm587_vm1, %v1453_v56  ;;  %v1091_v62 = vpop.permute.xlu2 %1090 }
 0x10d   : > { %1392 = vmatmul.msk.bf16.gmra.mxu0 %vm587_vm1, %v1454_v59 }
 0x11d   : > { %1393 = vmatmul.msk.bf16.gmra.mxu0 %vm587_vm1, %v1455_v6 }
 0x124   : > { %v709_v54 = vpop.f32.mrf.mxu3 }
 0x12c   : > { %v711_v55 = vpop.f32.mrf.mxu3 }
 0x12d   : > { %1394 = vmatmul.msk.bf16.gmra.mxu0 %vm587_vm1, %v1456_v21 }
 0x134   : > { %v714_v57 = vpop.f32.mrf.mxu3 }
 0x13c   : > { %v716_v58 = vpop.f32.mrf.mxu3 }
 0x13d   : > { %1395 = vmatmul.msk.bf16.gmra.mxu0 %vm587_vm1, %v1457_v37 }
 0x144   : > { %v719_v60 = vpop.f32.mrf.mxu3 }
 0x149   : > { %v609_v0 = vpop.f32.mrf.mxu1 }
 0x14a   : > { %v729_v1 = vmul.f32 %v709_v54, %v609_v0  ;;  %v1461_v54 = vld [vmem:[%s1810_s9 + $0x10] sm:$0xff] }
 0x14c   : > { %v785_v2 = vadd.f32 %v748_v63, %v729_v1  ;;  %v721_v3 = vpop.f32.mrf.mxu3  ;;  %v1096_v63 = vpop.permute.xlu0 %1095 }
 0x14d   : > { %v1106_v1 = vpop.permute.xlu2 %1105 }
 0x14e   : > { %794 = vst.msk [vmem:[%s1684_s28] sm:$0xff] %vm793_vm2, %v785_v2 }
 0x151   : > { %v611_v7 = vpop.f32.mrf.mxu1 }
 0x152   : > { %v730_v9 = vmul.f32 %v711_v55, %v611_v7  ;;  %v1464_v55 = vld [vmem:[%s1810_s9 + $0x28] sm:$0xff] }
 0x154   : > { %v786_v10 = vadd.f32 %v753_v8, %v730_v9  ;;  %v724_v11 = vpop.f32.mrf.mxu3  ;;  %v1111_v6 = vpop.permute.xlu0 %1110 }
 0x156   : > { %795 = vst.msk [vmem:[%s1684_s28 + $0x8] sm:$0xff] %vm793_vm2, %v786_v10 }
 0x159   : > { %v614_v15 = vpop.f32.mrf.mxu1 }
 0x15a   : > { %v731_v16 = vmul.f32 %v714_v57, %v614_v15 }
 0x15c   : > { %v787_v17 = vadd.f32 %v758_v14, %v731_v16  ;;  %v726_v18 = vpop.f32.mrf.mxu3  ;;  %v1116_v16 = vpop.permute.xlu1 %1115 }
 0x15e   : > { %796 = vst.msk [vmem:[%s1684_s28 + $0x10] sm:$0xff] %vm793_vm2, %v787_v17 }
 0x161   : > { %v616_v22 = vpop.f32.mrf.mxu1 }
 0x162   : > { %v732_v24 = vmul.f32 %v716_v58, %v616_v22 }
 0x164   : > { %v788_v25 = vadd.f32 %v763_v23, %v732_v24  ;;  %v959_v26 = vpop.f32.mrf.mxu3  ;;  %v1131_v27 = vpop.permute.xlu1 %1130 }
 0x166   : > { %797 = vst.msk [vmem:[%s1684_s28 + $0x18] sm:$0xff] %vm793_vm2, %v788_v25 }
 0x169   : > { %v619_v29 = vpop.f32.mrf.mxu1 }
 0x16a   : > { %v733_v30 = vmul.f32 %v719_v60, %v619_v29  ;;  %v912_v56 = vpop.f32.mrf.mxu0 }
 0x16c   : > { %v789_v31 = vadd.f32 %v768_v28, %v733_v30  ;;  %v961_v32 = vpop.f32.mrf.mxu3 }
 0x16d   : > { %v976_v34 = vpack.c.bf16 %v961_v32, %v959_v26 }
 0x16e   : > { %798 = vst.msk [vmem:[%s1684_s28 + $0x20] sm:$0xff] %vm793_vm2, %v789_v31 }
 0x16f   : > { %1032 = vmatpush.bf16.msrb.mxu1 %v976_v34  ;;  %1466 = vmatpush.bf16.msra.mxu2 %v976_v34 }
 0x171   : > { %v621_v38 = vpop.f32.mrf.mxu1 }
 0x172   : > { %v734_v40 = vmul.f32 %v721_v3, %v621_v38  ;;  %1425 = vmatmul.msk.bf16.vlgmr.msrb.gmra.mxu1 %vm513_vm0, %v1459_v35  ;;  %1428 = vmatmul.msk.bf16.vlgmr.msra.gmra.mxu2 %vm513_vm0, %v1462_v36  ;;  %v914_v57 = vpop.f32.mrf.mxu0 }
 0x174   : > { %v790_v42 = vadd.f32 %v773_v39, %v734_v40 }
 0x176   : > { %799 = vst.msk [vmem:[%s1684_s28 + $0x28] sm:$0xff] %vm793_vm2, %v790_v42 }
 0x179   : > { %v624_v43 = vpop.f32.mrf.mxu1 }
 0x17a   : > { %v735_v45 = vmul.f32 %v724_v11, %v624_v43  ;;  %v917_v58 = vpop.f32.mrf.mxu0  ;;  %v1121_v11 = vpop.permute.xlu2 %1120 }
 0x17c   : > { %v791_v46 = vadd.f32 %v778_v44, %v735_v45 }
 0x17e   : > { %800 = vst.msk [vmem:[%s1684_s28 + $0x30] sm:$0xff] %vm793_vm2, %v791_v46 }
 0x181   : > { %v626_v50 = vpop.f32.mrf.mxu1 }
 0x182   : > { %v736_v52 = vmul.f32 %v726_v18, %v626_v50  ;;  %1426 = vmatmul.msk.bf16.gmra.mxu1 %vm513_vm0, %v1460_v48  ;;  %1429 = vmatmul.msk.bf16.gmra.mxu2 %vm513_vm0, %v1463_v49  ;;  %v919_v59 = vpop.f32.mrf.mxu0  ;;  %v1126_v18 = vpop.permute.xlu0 %1125 }
 0x183   : > { %v1136_v35 = vpop.permute.xlu2 %1135  ;;  %v1146_v50 = vpop.permute.xlu1 %1145 }
 0x184   : > { %v792_v53 = vadd.f32 %v783_v51, %v736_v52 }
 0x186   : > { %801 = vst.msk [vmem:[%s1684_s28 + $0x38] sm:$0xff] %vm793_vm2, %v792_v53  ;;  %s1467_s28 = smul.u32 96, %s1816_s26 }
 0x188   : > { %s1772_s24 = scalar_lea.vmem %s1814_s13, %s1467_s28 }
 0x18a   : > { %v922_v60 = vpop.f32.mrf.mxu0  ;;  %v1141_v43 = vpop.permute.xlu0 %1140 }
 0x192   : > { %1427 = vmatmul.msk.bf16.gmra.mxu1 %vm513_vm0, %v1461_v54  ;;  %1430 = vmatmul.msk.bf16.gmra.mxu2 %vm513_vm0, %v1464_v55  ;;  %v924_v61 = vpop.f32.mrf.mxu0 }
 0x19a   : > { %v927_v0 = vpop.f32.mrf.mxu0 }
 0x1a2   : > { %v929_v8 = vpop.f32.mrf.mxu0 }
 0x1aa   : > { %v932_v20 = vpop.f32.mrf.mxu0 }
 0x1b2   : > { %v934_v30 = vpop.f32.mrf.mxu0 }
 0x1ba   : > { %v937_v39 = vpop.f32.mrf.mxu0 }
 0x1c2   : > { %v939_v47 = vpop.f32.mrf.mxu0 }
 0x1ef   : > { %v1034_v2 = vpop.f32.mrf.mxu1 }
 0x1f0   : > { %v1064_v3 = vmul.f32 %v1034_v2, %v912_v56 }
 0x1f2   : > { %v1148_v4 = vadd.f32 %v1091_v62, %v1064_v3 }
 0x1f4   : > { %1161 = vst.msk [vmem:[%s1772_s24] sm:$0xff] %vm1160_vm3, %v1148_v4 }
 0x1f5   : > { %v1049_v7 = vpop.f32.mrf.mxu2 }
 0x1f6   : > { %v1070_v9 = vmul.f32 %v1049_v7, %v927_v0 }
 0x1f7   : > { %v1036_v10 = vpop.f32.mrf.mxu1 }
 0x1f8   : > { %v1065_v12 = vmul.f32 %v1036_v10, %v914_v57  ;;  %v1154_v13 = vadd.f32 %v1121_v11, %v1070_v9 }
 0x1fa   : > { %v1149_v14 = vadd.f32 %v1096_v63, %v1065_v12  ;;  %1167 = vst.msk [vmem:[%s1772_s24 + $0x30] sm:$0xff] %vm1160_vm3, %v1154_v13 }
 0x1fc   : > { %1162 = vst.msk [vmem:[%s1772_s24 + $0x8] sm:$0xff] %vm1160_vm3, %v1149_v14 }
 0x1fd   : > { %v1051_v15 = vpop.f32.mrf.mxu2 }
 0x1fe   : > { %v1071_v17 = vmul.f32 %v1051_v15, %v929_v8 }
 0x1ff   : > { %v1039_v19 = vpop.f32.mrf.mxu1 }
 0x200   : > { %v1066_v21 = vmul.f32 %v1039_v19, %v917_v58  ;;  %v1155_v22 = vadd.f32 %v1126_v18, %v1071_v17 }
 0x202   : > { %v1150_v23 = vadd.f32 %v1101_v5, %v1066_v21  ;;  %1168 = vst.msk [vmem:[%s1772_s24 + $0x38] sm:$0xff] %vm1160_vm3, %v1155_v22 }
 0x204   : > { %1163 = vst.msk [vmem:[%s1772_s24 + $0x10] sm:$0xff] %vm1160_vm3, %v1150_v23 }
 0x205   : > { %v1054_v24 = vpop.f32.mrf.mxu2 }
 0x206   : > { %v1072_v25 = vmul.f32 %v1054_v24, %v932_v20 }
 0x207   : > { %v1041_v26 = vpop.f32.mrf.mxu1 }
 0x208   : > { %v1067_v28 = vmul.f32 %v1041_v26, %v919_v59  ;;  %v1156_v29 = vadd.f32 %v1131_v27, %v1072_v25 }
 0x20a   : > { %v1151_v31 = vadd.f32 %v1106_v1, %v1067_v28  ;;  %1169 = vst.msk [vmem:[%s1772_s24 + $0x40] sm:$0xff] %vm1160_vm3, %v1156_v29 }
 0x20c   : > { %1164 = vst.msk [vmem:[%s1772_s24 + $0x18] sm:$0xff] %vm1160_vm3, %v1151_v31 }
 0x20d   : > { %v1056_v32 = vpop.f32.mrf.mxu2 }
 0x20e   : > { %v1073_v33 = vmul.f32 %v1056_v32, %v934_v30 }
 0x20f   : > { %v1044_v34 = vpop.f32.mrf.mxu1 }
 0x210   : > { %v1068_v36 = vmul.f32 %v1044_v34, %v922_v60  ;;  %v1157_v37 = vadd.f32 %v1136_v35, %v1073_v33 }
 0x212   : > { %v1152_v38 = vadd.f32 %v1111_v6, %v1068_v36  ;;  %1170 = vst.msk [vmem:[%s1772_s24 + $0x48] sm:$0xff] %vm1160_vm3, %v1157_v37 }
 0x214   : > { %1165 = vst.msk [vmem:[%s1772_s24 + $0x20] sm:$0xff] %vm1160_vm3, %v1152_v38 }
 0x215   : > { %v1059_v40 = vpop.f32.mrf.mxu2 }
 0x216   : > { %v1074_v41 = vmul.f32 %v1059_v40, %v937_v39 }
 0x217   : > { %v1046_v42 = vpop.f32.mrf.mxu1 }
 0x218   : > { %v1069_v44 = vmul.f32 %v1046_v42, %v924_v61  ;;  %v1158_v45 = vadd.f32 %v1141_v43, %v1074_v41 }
 0x21a   : > { %v1153_v46 = vadd.f32 %v1116_v16, %v1069_v44  ;;  %1171 = vst.msk [vmem:[%s1772_s24 + $0x50] sm:$0xff] %vm1160_vm3, %v1158_v45 }
 0x21c   : > { %1166 = vst.msk [vmem:[%s1772_s24 + $0x28] sm:$0xff] %vm1160_vm3, %v1153_v46 }
 0x21d   : > { %v1061_v48 = vpop.f32.mrf.mxu2 }
 0x21e   : > { %v1075_v49 = vmul.f32 %v1061_v48, %v939_v47 }
 0x220   : > { %v1159_v51 = vadd.f32 %v1146_v50, %v1075_v49 }
 0x222   : > { %1172 = vst.msk [vmem:[%s1772_s24 + $0x58] sm:$0xff] %vm1160_vm3, %v1159_v51 }
 0x223 PF: > { %s24_s25 = sadd.s32 1, %s1486_s25  }
 0x224   : > { %p21_p4 = scmp.ge.s32.totalorder %s24_s25, 4  }
 0x226   :  { %23 = sbr.rel (!%p21_p4) target bundleno = 1 (0x1), region = 113 }

// kernel: mscc_forward.5
= control target key start
LH: loop header
LB: loop body
LE: loop exit
PB: predicated region body
PF: predicated region fallthrough
CT: control target
= control target key end

     0   :  { %12 = vsyncpa [#allocation3], 0  ;;  %s1824_s0 = inlined_call_operand.vmem [shape: f32[16,16,16], index: 0, kind: input, shape index: {}]   ;;  %s1825_s1 = inlined_call_operand.vmem [shape: f32[16,8,8], index: 1, kind: input, shape index: {}]   ;;  %s1826_s2 = inlined_call_operand.vmem [shape: f32[16,12,12], index: 2, kind: input, shape index: {}]   ;;  %s1827_s3 = inlined_call_operand.vmem [shape: bf16[16,8], index: 3, kind: input, shape index: {}]   ;;  %s1828_s4 = inlined_call_operand.vmem [shape: bf16[8,16], index: 4, kind: input, shape index: {}]   ;;  %s1829_s5 = inlined_call_operand.vmem [shape: bf16[16,12], index: 5, kind: input, shape index: {}]   ;;  %s1830_s6 = inlined_call_operand.vmem [shape: bf16[12,16], index: 6, kind: input, shape index: {}]   ;;  %s1831_s7 = inlined_call_operand.hbm [shape: f32[16,16,16], index: 7, kind: output, shape index: {}]  }
   0x1   :  { %14 = vsyncpa [#allocation3 + $0x1], 0  ;;  %s1442_s24 = smov 0   ;;  %s1444_s25 = smov 0  }
   0x2   :  { %s1446_s26 = smov 0   ;;  %s1448_s27 = smov 0  }
   0x3 LB: > { %s1463_s28 = sadd.s32 4294967295, %s1398_s27   ;;  %s1225_s29 = sadd.s32 4294967294, %s1398_s27   ;;  %s1398_s27 = sphi %s1448_s27, %s1846_s27   ;;  %s1394_s26 = sphi %s1446_s26, %s1845_s26   ;;  %s1390_s25 = sphi %s1444_s25, %s1844_s25   ;;  %s1386_s24 = sphi %s1442_s24, %s1843_s24  }
   0x4   : > { %s1467_s30 = sadd.s32 1, %s1398_s27   ;;  %s189_s8 = sadd.s32 1, %s1394_s26 }
   0x5   : > { %s186_s9 = ssub.s32 %s1398_s27, %s1467_s30  ;;  %p199_p0 = scmp.ne.s32.totalorder %s1394_s26, %s1390_s25 }
   0x6   : > { %p187_p1 = scmp.eq.s32.totalorder %s186_s9, 0  ;;  %p200_p2 = scmp.eq.s32.totalorder %s1463_s28, 1 }
   0x7   : > { %p205_p3 = scmp.ne.s32.totalorder %s1390_s25, %s1386_s24  ;;  %p206_p4 = scmp.eq.s32.totalorder %s1225_s29, 1 }
   0x8   : > { %s1478_s10 = scalar_select %p187_p1, %s1394_s26, %s189_s8  }
   0x9   : > { %p1480_p5 = por %p200_p2, %p199_p0  ;;  %p1484_p6 = por %p206_p4, %p205_p3 }
   0xa   : > { %p1228_p7 = scmp.ge.s32.totalorder %s1398_s27, 1  ;;  %p265_p8 = scmp.lt.s32.totalorder %s1398_s27, 3 }
   0xc   : > { %p266_p9 = pnand %p1228_p7, %p265_p8 }
   0xd   : > { %s1230_s15 = sshll.u32 (!%p266_p9), %s1463_s28, 3  ;;  %s306_s21 = sand.u32 (!%p266_p9), 1, %s1390_s25  }
   0xe   : > { %269 = sbr.rel (%p266_p9) target bundleno = 511 (0x1ff), region = 48  ;;  %p310_p10 = scmp.lt.s32.totalorder (!%p266_p9), %s1230_s15, 15 }
   0xf   : > { %s1229_s22 = sshll.u32 (!%p266_p9), %s306_s21, 7  ;;  %s1294_s29 = sshll.u32 (!%p266_p9), %s1463_s28, 7 }
  0x10   : > { %s1714_s23 = scalar_lea.vmem (!%p266_p9), [#allocation2], %s1229_s22  ;;  %s1135_s13 = scalar_lea.hbm (!%p266_p9), %s1831_s7, %s1294_s29 }
  0x11   : > { %s1136_s14 = sshll.u32 (!%p266_p9), %s1714_s23, 4  ;;  %s1138_s28 = sshll.u32 (!%p266_p9), %s1135_s13, 4  ;;  %s1137_s14 = int_to_ptr.vmem [resolvable:$true] %s1136_s14  ;;  %s1139_s28 = int_to_ptr.hbm [resolvable:$true] %s1138_s28 }
  0x12   : > { %s1350_s17 = sshra.s32 (!%p266_p9), %s1139_s28, 4  ;;  %s1356_s20 = scalar_lea.hbm (!%p266_p9), %s1831_s7, 256  ;;  %s1351_s17 = int_to_ptr.hbm [resolvable:$true] %s1350_s17 }
  0x13   : > { %v363_v0 = vld [vmem:[%s1828_s4] sm:$0xf]  ;;  %vm370_vm0 = vcmask 1043456   ;;  %s1848_s15 = smov (!%p310_p10, %s1230_s15), 15  ;;  %vm366_vm1 = vcmask 64512   ;;  %vm717_vm2 = vcmask 1045504   ;;  %p1357_p0 = scmp.lt.s32.totalorder %s1351_s17, %s1831_s7 }
  0x14   : > { %v372_v1 = vsel %vm370_vm0, %v363_v0, 0  ;;  %s1234_s16 = sshll.u32 %s1848_s15, 3  ;;  %v1290_v24 = vld [vmem:[%s1827_s3] sm:$0xff]  ;;  %s1288_s9 = sshll.u32 %s1848_s15, 4  ;;  %vm713_vm3 = vcmask 97280   ;;  %vm1105_vm4 = vcmask 130048  }
  0x15   : > { %381 = vmatpush.bf16.msra.mxu0 %v372_v1  ;;  %397 = vmatpush.bf16.msra.mxu1 %v372_v1  ;;  %s320_s19 = scalar_lea.vmem %s1825_s1, %s1234_s16  ;;  %v1260_v33 = vld [vmem:[%s1830_s6] sm:$0xf]  ;;  %v1291_v34 = vld [vmem:[%s1830_s6] sm:$0x30]  ;;  %s1535_s16 = scalar_lea.vmem %s1826_s2, %s1288_s9 }
  0x16   : > { %413 = vmatpush.bf16.msra.mxu2 %v372_v1  ;;  %429 = vmatpush.bf16.msra.mxu3 %v372_v1  ;;  %v347_v2 = vld [vmem:[%s320_s19] sm:$0xff]  ;;  %v348_v3 = vld [vmem:[%s320_s19 + $0x8] sm:$0xff]  ;;  %v349_v4 = vld [vmem:[%s320_s19 + $0x10] sm:$0xff]  ;;  %v1261_v35 = vor.u32 %v1291_v34, %v1260_v33  ;;  %s1352_s18 = scalar_lea.hbm %s1351_s17, 128 }
  0x17   : > { %v355_v5 = vpack.c.bf16 %v347_v2, %v347_v2  ;;  %v356_v6 = vpack.c.bf16 %v348_v3, %v348_v3  ;;  %v357_v7 = vpack.c.bf16 %v349_v4, %v349_v4  ;;  %v350_v8 = vld [vmem:[%s320_s19 + $0x18] sm:$0xff]  ;;  %v351_v10 = vld [vmem:[%s320_s19 + $0x20] sm:$0xff]  ;;  %v352_v11 = vld [vmem:[%s320_s19 + $0x28] sm:$0xff]  ;;  %p1353_p11 = scmp.ne.s32.totalorder %s1351_s17, %s1352_s18  ;;  %p1358_p1 = scmp.lt.s32.totalorder %s1356_s20, %s1352_s18 }
  0x18   : > { %v358_v9 = vpack.c.bf16 %v350_v8, %v350_v8  ;;  %v353_v12 = vld [vmem:[%s320_s19 + $0x30] sm:$0xff]  ;;  %v354_v13 = vld [vmem:[%s320_s19 + $0x38] sm:$0xff]  ;;  %v359_v14 = vpack.c.bf16 %v351_v10, %v351_v10  ;;  %v360_v15 = vpack.c.bf16 %v352_v11, %v352_v11  ;;  %v719_v42 = vsel %vm717_vm2, %v1261_v35, 0  ;;  %v667_v47 = vld [vmem:[%s1535_s16] sm:$0xff]  ;;  %s1572_s19 = scalar_lea.vmem %s1824_s0, %s1288_s9 }
  0x19   : > { %445 = vmatpush.bf16.msrb.mxu0 %v372_v1  ;;  %461 = vmatpush.bf16.msrb.mxu1 %v372_v1  ;;  %v361_v16 = vpack.c.bf16 %v353_v12, %v353_v12  ;;  %v362_v17 = vpack.c.bf16 %v354_v13, %v354_v13  ;;  %v668_v52 = vld [vmem:[%s1535_s16 + $0x8] sm:$0xf]  ;;  %v669_v53 = vld [vmem:[%s1535_s16 + $0x10] sm:$0xff]  ;;  %v670_v54 = vld [vmem:[%s1535_s16 + $0x18] sm:$0xf]  ;;  %v683_v57 = vpack.c.bf16 %v667_v47, %v667_v47  ;;  %p1354_p12 = pnand %p1353_p11, %p1480_p5  ;;  %p1359_p2 = por %p1358_p1, %p1357_p0 }
  0x1a   : > { %477 = vmatpush.bf16.msrb.mxu2 %v372_v1  ;;  %493 = vmatpush.bf16.msrb.mxu3 %v372_v1  ;;  %v684_v58 = vpack.c.bf16 %v668_v52, %v668_v52  ;;  %v685_v59 = vpack.c.bf16 %v669_v53, %v669_v53  ;;  %v686_v60 = vpack.c.bf16 %v670_v54, %v670_v54  ;;  %v671_v61 = vld [vmem:[%s1535_s16 + $0x20] sm:$0xff]  ;;  %v672_v4 = vld [vmem:[%s1535_s16 + $0x28] sm:$0xf]  ;;  %v681_v33 = vld [vmem:[%s1535_s16 + $0x70] sm:$0xff] }
  0x1b   : > { %1238 = vmatmul.msk.bf16.vlgmr.msra.gmra.mxu0 %vm366_vm1, %v355_v5  ;;  %1239 = vmatmul.msk.bf16.vlgmr.msra.gmra.mxu1 %vm366_vm1, %v356_v6  ;;  %v705_v0 = vunpack.c.l.b16 %v683_v57  ;;  %v673_v5 = vld [vmem:[%s1535_s16 + $0x30] sm:$0xff]  ;;  %v674_v6 = vld [vmem:[%s1535_s16 + $0x38] sm:$0xf]  ;;  %v688_v8 = vpack.c.bf16 %v672_v4, %v672_v4  ;;  %v1575_v47 = vld [vmem:[%s1572_s19] sm:$0xff]  ;;  %p1355_p13 = pneg %p1354_p12 }
  0x1c   : > { %1240 = vmatmul.msk.bf16.vlgmr.msra.gmra.mxu2 %vm366_vm1, %v357_v7  ;;  %1241 = vmatmul.msk.bf16.vlgmr.msra.gmra.mxu3 %vm366_vm1, %v358_v9  ;;  %v706_v1 = vunpack.c.l.b16 %v684_v58  ;;  %v737_v2 = vunpack.c.l.b16 %v685_v59  ;;  %v738_v3 = vunpack.c.l.b16 %v686_v60  ;;  %v687_v7 = vpack.c.bf16 %v671_v61, %v671_v61  ;;  %v682_v34 = vld [vmem:[%s1535_s16 + $0x78] sm:$0xf]  ;;  %v1589_v53 = vld [vmem:[%s1572_s19 + $0x8] sm:$0xff]  ;;  %v1603_v59 = vld [vmem:[%s1572_s19 + $0x20] sm:$0xff] }
  0x1d   : > { %v689_v9 = vpack.c.bf16 %v673_v5, %v673_v5  ;;  %v690_v10 = vpack.c.bf16 %v674_v6, %v674_v6  ;;  %v1592_v54 = vld [vmem:[%s1572_s19 + $0x18] sm:$0xff]  ;;  %v1606_v60 = vld [vmem:[%s1572_s19 + $0x30] sm:$0xff]  ;;  %p1360_p3 = pnand %p1359_p2, %p1355_p13 }
  0x1e   : > { %v707_v11 = vpack.c.b16 %v706_v1, %v705_v0  ;;  %v739_v12 = vpack.c.b16 %v738_v3, %v737_v2  ;;  %v759_v13 = vunpack.c.l.b16 %v687_v7  ;;  %v1617_v1 = vld [vmem:[%s1572_s19 + $0x40] sm:$0xff]  ;;  %v1620_v2 = vld [vmem:[%s1572_s19 + $0x50] sm:$0xff]  ;;  %v1631_v7 = vld [vmem:[%s1572_s19 + $0x28] sm:$0xff] }
  0x2b   : > { %1242 = vmatmul.msk.bf16.vlgmr.msrb.gmra.mxu0 %vm366_vm1, %v359_v14  ;;  %1243 = vmatmul.msk.bf16.vlgmr.msrb.gmra.mxu1 %vm366_vm1, %v360_v15  ;;  %v760_v14 = vunpack.c.l.b16 %v688_v8  ;;  %v781_v15 = vunpack.c.l.b16 %v689_v9  ;;  %v1634_v8 = vld [vmem:[%s1572_s19 + $0x38] sm:$0xff] }
  0x2c   : > { %1244 = vmatmul.msk.bf16.vlgmr.msrb.gmra.mxu2 %vm366_vm1, %v361_v16  ;;  %1245 = vmatmul.msk.bf16.vlgmr.msrb.gmra.mxu3 %vm366_vm1, %v362_v17  ;;  %v782_v16 = vunpack.c.l.b16 %v690_v10  ;;  %v675_v17 = vld [vmem:[%s1535_s16 + $0x40] sm:$0xff] }
  0x98   : > { %v383_v18 = vpop.f32.mrf.mxu0  ;;  %v399_v19 = vpop.f32.mrf.mxu1 }
  0x99   : > { %v499_v20 = vpack.c.bf16 %v383_v18, %v383_v18  ;;  %v500_v21 = vpack.c.bf16 %v399_v19, %v399_v19  ;;  %v676_v18 = vld [vmem:[%s1535_s16 + $0x48] sm:$0xf]  ;;  %v677_v19 = vld [vmem:[%s1535_s16 + $0x50] sm:$0xff] }
  0x9b   : > { %v516_v22 = vsel %vm370_vm0, %v499_v20, 0  ;;  %v533_v23 = vsel %vm370_vm0, %v500_v21, 0  ;;  %v678_v20 = vld [vmem:[%s1535_s16 + $0x58] sm:$0xf]  ;;  %v761_v21 = vpack.c.b16 %v760_v14, %v759_v13  ;;  %v1645_v13 = vld [vmem:[%s1572_s19 + $0x48] sm:$0xff] }
  0x9c   : > { %525 = vmatpush.bf16.msra.mxu0 %v516_v22  ;;  %542 = vmatpush.bf16.msra.mxu1 %v533_v23  ;;  %v783_v22 = vpack.c.b16 %v782_v16, %v781_v15  ;;  %v691_v23 = vpack.c.bf16 %v675_v17, %v675_v17  ;;  %v1648_v14 = vld [vmem:[%s1572_s19 + $0x58] sm:$0xff] }
  0x9f   : > { %v415_v25 = vpop.f32.mrf.mxu2  ;;  %v431_v26 = vpop.f32.mrf.mxu3  ;;  %1250 = vmatmul.msk.bf16.vlgmr.msra.gmra.mxu0 %vm366_vm1, %v1290_v24  ;;  %1251 = vmatmul.msk.bf16.vlgmr.msra.gmra.mxu1 %vm366_vm1, %v1290_v24 }
  0xa0   : > { %v501_v27 = vpack.c.bf16 %v415_v25, %v415_v25  ;;  %v502_v28 = vpack.c.bf16 %v431_v26, %v431_v26  ;;  %v385_v29 = vpop.f32.mrf.mxu0  ;;  %v401_v30 = vpop.f32.mrf.mxu1  ;;  %v693_v25 = vpack.c.bf16 %v677_v19, %v677_v19  ;;  %v694_v26 = vpack.c.bf16 %v678_v20, %v678_v20  ;;  %v1659_v19 = vld [vmem:[%s1572_s19 + $0x60] sm:$0xff]  ;;  %v1662_v20 = vld [vmem:[%s1572_s19 + $0x70] sm:$0xff] }
  0xa2   : > { %v550_v31 = vsel %vm370_vm0, %v501_v27, 0  ;;  %v567_v32 = vsel %vm370_vm0, %v502_v28, 0  ;;  %v679_v27 = vld [vmem:[%s1535_s16 + $0x60] sm:$0xff]  ;;  %v803_v28 = vunpack.c.l.b16 %v691_v23  ;;  %v825_v30 = vunpack.c.l.b16 %v693_v25 }
  0xa3   : > { %559 = vmatpush.bf16.msra.mxu2 %v550_v31  ;;  %576 = vmatpush.bf16.msra.mxu3 %v567_v32  ;;  %v826_v31 = vunpack.c.l.b16 %v694_v26  ;;  %v680_v32 = vld [vmem:[%s1535_s16 + $0x68] sm:$0xf]  ;;  %v695_v35 = vpack.c.bf16 %v679_v27, %v679_v27  ;;  %s1123_s16 = scalar_lea.sflag [#allocation3], %s306_s21 }
  0xa4   : > { %v1673_v27 = vld [vmem:[%s1572_s19 + $0x68] sm:$0xff] }
  0xa6   : > { %1252 = vmatmul.msk.bf16.vlgmr.msra.gmra.mxu2 %vm366_vm1, %v1290_v24  ;;  %1253 = vmatmul.msk.bf16.vlgmr.msra.gmra.mxu3 %vm366_vm1, %v1290_v24 }
  0xa7   : > { %v417_v36 = vpop.f32.mrf.mxu2  ;;  %v433_v37 = vpop.f32.mrf.mxu3 }
  0xa8   : > { %v447_v38 = vpop.f32.mrf.mxu0  ;;  %v463_v39 = vpop.f32.mrf.mxu1  ;;  %v696_v36 = vpack.c.bf16 %v680_v32, %v680_v32  ;;  %v697_v37 = vpack.c.bf16 %v681_v33, %v681_v33 }
  0xa9   : > { %v503_v40 = vpack.c.bf16 %v447_v38, %v447_v38  ;;  %v504_v41 = vpack.c.bf16 %v463_v39, %v463_v39  ;;  %v698_v38 = vpack.c.bf16 %v682_v34, %v682_v34  ;;  %v1292_v34 = vld [vmem:[%s1829_s5] sm:$0xff] }
  0xab   : > { %v584_v43 = vsel %vm370_vm0, %v503_v40, 0  ;;  %v601_v44 = vsel %vm370_vm0, %v504_v41, 0  ;;  %v827_v40 = vpack.c.b16 %v826_v31, %v825_v30  ;;  %v847_v41 = vunpack.c.l.b16 %v695_v35 }
  0xac   : > { %593 = vmatpush.bf16.msrb.mxu0 %v584_v43  ;;  %610 = vmatpush.bf16.msrb.mxu1 %v601_v44  ;;  %v869_v43 = vunpack.c.l.b16 %v697_v37  ;;  %v870_v44 = vunpack.c.l.b16 %v698_v38 }
  0xaf   : > { %v479_v45 = vpop.f32.mrf.mxu2  ;;  %v495_v46 = vpop.f32.mrf.mxu3  ;;  %1254 = vmatmul.msk.bf16.vlgmr.msrb.gmra.mxu0 %vm366_vm1, %v1290_v24  ;;  %1255 = vmatmul.msk.bf16.vlgmr.msrb.gmra.mxu1 %vm366_vm1, %v1290_v24 }
  0xb0   : > { %728 = vmatpush.bf16.msra.mxu0 %v719_v42  ;;  %750 = vmatpush.bf16.msra.mxu1 %v719_v42  ;;  %v505_v48 = vpack.c.bf16 %v479_v45, %v479_v45  ;;  %v506_v49 = vpack.c.bf16 %v495_v46, %v495_v46  ;;  %v449_v50 = vpop.f32.mrf.mxu0  ;;  %v465_v51 = vpop.f32.mrf.mxu1  ;;  %v871_v46 = vpack.c.b16 %v870_v44, %v869_v43 }
  0xb2   : > { %v618_v55 = vsel %vm370_vm0, %v505_v48, 0  ;;  %v635_v56 = vsel %vm370_vm0, %v506_v49, 0  ;;  %v1578_v48 = vld [vmem:[%s1572_s19 + $0x10] sm:$0xff] }
  0xb3   : > { %627 = vmatpush.bf16.msrb.mxu2 %v618_v55  ;;  %644 = vmatpush.bf16.msrb.mxu3 %v635_v56 }
  0xb4   : > { %816 = vmatpush.bf16.msrb.mxu0 %v719_v42  ;;  %838 = vmatpush.bf16.msrb.mxu1 %v719_v42 }
  0xb6   : > { %1256 = vmatmul.msk.bf16.vlgmr.msrb.gmra.mxu2 %vm366_vm1, %v1290_v24  ;;  %1257 = vmatmul.msk.bf16.vlgmr.msrb.gmra.mxu3 %vm366_vm1, %v1290_v24  ;;  %v692_v24 = vpack.c.bf16 %v676_v18, %v676_v18 }
  0xb7   : > { %772 = vmatpush.bf16.msra.mxu2 %v719_v42  ;;  %794 = vmatpush.bf16.msra.mxu3 %v719_v42  ;;  %v481_v62 = vpop.f32.mrf.mxu2  ;;  %v497_v63 = vpop.f32.mrf.mxu3 }
  0xb8   : > { %v804_v29 = vunpack.c.l.b16 %v692_v24 }
  0xba   : > { %v805_v39 = vpack.c.b16 %v804_v29, %v803_v28  ;;  %v1676_v28 = vld [vmem:[%s1572_s19 + $0x78] sm:$0xff] }
  0xbb   : > { %860 = vmatpush.bf16.msrb.mxu2 %v719_v42  ;;  %882 = vmatpush.bf16.msrb.mxu3 %v719_v42  ;;  %v848_v42 = vunpack.c.l.b16 %v696_v36 }
  0xbd   : > { %v849_v45 = vpack.c.b16 %v848_v42, %v847_v41 }
  0xbf   : > { %1262 = vmatmul.msk.bf16.vlgmr.msra.gmra.mxu0 %vm713_vm3, %v707_v11  ;;  %1263 = vmatmul.msk.bf16.vlgmr.msra.gmra.mxu1 %vm713_vm3, %v739_v12 }
  0xc6   : > { %1264 = vmatmul.msk.bf16.vlgmr.msra.gmra.mxu2 %vm713_vm3, %v761_v21  ;;  %1265 = vmatmul.msk.bf16.vlgmr.msra.gmra.mxu3 %vm713_vm3, %v783_v22 }
  0xcf   : > { %1266 = vmatmul.msk.bf16.vlgmr.msrb.gmra.mxu0 %vm713_vm3, %v805_v39  ;;  %1267 = vmatmul.msk.bf16.vlgmr.msrb.gmra.mxu1 %vm713_vm3, %v827_v40 }
  0xd6   : > { %1268 = vmatmul.msk.bf16.vlgmr.msrb.gmra.mxu2 %vm713_vm3, %v849_v45  ;;  %1269 = vmatmul.msk.bf16.vlgmr.msrb.gmra.mxu3 %vm713_vm3, %v871_v46 }
 0x11c   : > { %v1580_v49 = vpop.f32.mrf.mxu0  ;;  %v1582_v50 = vpop.f32.mrf.mxu1 }
 0x11d   : > { %v651_v51 = vmax.f32 %v1575_v47, %v1580_v49  ;;  %v653_v52 = vmax.f32 %v1578_v48, %v1582_v50 }
 0x124   : > { %v1594_v55 = vpop.f32.mrf.mxu0  ;;  %v1596_v56 = vpop.f32.mrf.mxu1 }
 0x125   : > { %v652_v57 = vmax.f32 %v1589_v53, %v1594_v55  ;;  %v654_v58 = vmax.f32 %v1592_v54, %v1596_v56 }
 0x129   : > { %v1608_v61 = vpop.f32.mrf.mxu2  ;;  %v1610_v62 = vpop.f32.mrf.mxu3 }
 0x12a   : > { %v655_v63 = vmax.f32 %v1603_v59, %v1608_v61  ;;  %v1834_v56 = vmax.f32 %v1606_v60, %v1610_v62 }
 0x12c   : > { %v1622_v3 = vpop.f32.mrf.mxu0  ;;  %v1624_v4 = vpop.f32.mrf.mxu1 }
 0x12d   : > { %v659_v5 = vmax.f32 %v1617_v1, %v1622_v3  ;;  %v661_v6 = vmax.f32 %v1620_v2, %v1624_v4 }
 0x131   : > { %v1636_v9 = vpop.f32.mrf.mxu2  ;;  %v1638_v10 = vpop.f32.mrf.mxu3 }
 0x132   : > { %v1837_v4 = vmax.f32 %v1631_v7, %v1636_v9 }
 0x134   : > { %v1650_v15 = vpop.f32.mrf.mxu0  ;;  %v1652_v16 = vpop.f32.mrf.mxu1 }
 0x135   : > { %v1835_v3 = vmax.f32 %v1645_v13, %v1650_v15  ;;  %v1836_v61 = vmax.f32 %v1648_v14, %v1652_v16 }
 0x139   : > { %v1664_v21 = vpop.f32.mrf.mxu2  ;;  %v1666_v22 = vpop.f32.mrf.mxu3 }
 0x13a   : > { %v1839_v16 = vmax.f32 %v1659_v19, %v1664_v21 }
 0x13c   : > { %v730_v25 = vpop.f32.mrf.mxu0  ;;  %v752_v26 = vpop.f32.mrf.mxu1 }
 0x13d   : > { %v889_v29 = vpack.c.bf16 %v730_v25, %v730_v25  ;;  %v891_v30 = vpack.c.bf16 %v752_v26, %v752_v26 }
 0x13f   : > { %v912_v37 = vunpack.c.l.b16 %v889_v29  ;;  %v937_v38 = vunpack.c.l.b16 %v891_v30 }
 0x141   : > { %v1678_v31 = vpop.f32.mrf.mxu2  ;;  %v1680_v32 = vpop.f32.mrf.mxu3 }
 0x142   : > { %v1841_v19 = vmax.f32 %v1673_v27, %v1678_v31 }
 0x144   : > { %v732_v35 = vpop.f32.mrf.mxu0  ;;  %v754_v36 = vpop.f32.mrf.mxu1 }
 0x145   : > { %v890_v39 = vpack.c.bf16 %v732_v35, %v732_v35  ;;  %v892_v40 = vpack.c.bf16 %v754_v36, %v754_v36 }
 0x147   : > { %v913_v41 = vunpack.c.l.b16 %v890_v39  ;;  %v938_v42 = vunpack.c.l.b16 %v892_v40 }
 0x149   : > { %v914_v43 = vpack.c.b16 %v913_v41, %v912_v37  ;;  %v939_v44 = vpack.c.b16 %v938_v42, %v937_v38  ;;  %v774_v45 = vpop.f32.mrf.mxu2  ;;  %v796_v46 = vpop.f32.mrf.mxu3 }
 0x14a   : > { %v893_v29 = vpack.c.bf16 %v774_v45, %v774_v45  ;;  %v895_v30 = vpack.c.bf16 %v796_v46, %v796_v46 }
 0x14b   : > { %v919_v25 = vsel %vm717_vm2, %v914_v43, 0  ;;  %v941_v26 = vsel %vm717_vm2, %v939_v44, 0 }
 0x14c   : > { %v818_v33 = vpop.f32.mrf.mxu0  ;;  %v840_v24 = vpop.f32.mrf.mxu1  ;;  %928 = vmatpush.bf16.msra.mxu0 %v919_v25  ;;  %950 = vmatpush.bf16.msra.mxu1 %v941_v26  ;;  %v959_v41 = vunpack.c.l.b16 %v893_v29  ;;  %v981_v42 = vunpack.c.l.b16 %v895_v30 }
 0x14d   : > { %v897_v35 = vpack.c.bf16 %v818_v33, %v818_v33  ;;  %v899_v36 = vpack.c.bf16 %v840_v24, %v840_v24 }
 0x14f   : > { %1274 = vmatmul.msk.bf16.vlgmr.msra.gmra.mxu0 %vm713_vm3, %v1292_v34  ;;  %1275 = vmatmul.msk.bf16.vlgmr.msra.gmra.mxu1 %vm713_vm3, %v1292_v34  ;;  %v1003_v25 = vunpack.c.l.b16 %v897_v35  ;;  %v1025_v26 = vunpack.c.l.b16 %v899_v36 }
 0x151   : > { %v776_v37 = vpop.f32.mrf.mxu2  ;;  %v798_v38 = vpop.f32.mrf.mxu3 }
 0x152   : > { %v894_v39 = vpack.c.bf16 %v776_v37, %v776_v37  ;;  %v896_v40 = vpack.c.bf16 %v798_v38, %v798_v38 }
 0x154   : > { %v960_v43 = vunpack.c.l.b16 %v894_v39  ;;  %v982_v44 = vunpack.c.l.b16 %v896_v40  ;;  %v820_v23 = vpop.f32.mrf.mxu0  ;;  %v842_v12 = vpop.f32.mrf.mxu1 }
 0x155   : > { %v898_v11 = vpack.c.bf16 %v820_v23, %v820_v23  ;;  %v900_v18 = vpack.c.bf16 %v842_v12, %v842_v12 }
 0x156   : > { %v961_v17 = vpack.c.b16 %v960_v43, %v959_v41  ;;  %v983_v0 = vpack.c.b16 %v982_v44, %v981_v42 }
 0x157   : > { %v1004_v45 = vunpack.c.l.b16 %v898_v11  ;;  %v1026_v46 = vunpack.c.l.b16 %v900_v18 }
 0x158   : > { %v963_v24 = vsel %vm717_vm2, %v961_v17, 0  ;;  %v985_v33 = vsel %vm717_vm2, %v983_v0, 0 }
 0x159   : > { %v1005_v37 = vpack.c.b16 %v1004_v45, %v1003_v25  ;;  %v1027_v38 = vpack.c.b16 %v1026_v46, %v1025_v26  ;;  %v862_v29 = vpop.f32.mrf.mxu2  ;;  %v884_v30 = vpop.f32.mrf.mxu3  ;;  %972 = vmatpush.bf16.msra.mxu2 %v963_v24  ;;  %994 = vmatpush.bf16.msra.mxu3 %v985_v33 }
 0x15a   : > { %v901_v11 = vpack.c.bf16 %v862_v29, %v862_v29  ;;  %v903_v12 = vpack.c.bf16 %v884_v30, %v884_v30 }
 0x15b   : > { %v1007_v39 = vsel %vm717_vm2, %v1005_v37, 0  ;;  %v1029_v35 = vsel %vm717_vm2, %v1027_v38, 0 }
 0x15c   : > { %1276 = vmatmul.msk.bf16.vlgmr.msra.gmra.mxu2 %vm713_vm3, %v1292_v34  ;;  %1277 = vmatmul.msk.bf16.vlgmr.msra.gmra.mxu3 %vm713_vm3, %v1292_v34  ;;  %v1047_v36 = vunpack.c.l.b16 %v901_v11  ;;  %v1069_v40 = vunpack.c.l.b16 %v903_v12 }
 0x15d   : > { %1016 = vmatpush.bf16.msrb.mxu0 %v1007_v39  ;;  %1038 = vmatpush.bf16.msrb.mxu1 %v1029_v35 }
 0x160   : > { %1278 = vmatmul.msk.bf16.vlgmr.msrb.gmra.mxu0 %vm713_vm3, %v1292_v34  ;;  %1279 = vmatmul.msk.bf16.vlgmr.msrb.gmra.mxu1 %vm713_vm3, %v1292_v34 }
 0x161   : > { %v864_v0 = vpop.f32.mrf.mxu2  ;;  %v886_v17 = vpop.f32.mrf.mxu3 }
 0x162   : > { %v902_v18 = vpack.c.bf16 %v864_v0, %v864_v0  ;;  %v904_v23 = vpack.c.bf16 %v886_v17, %v886_v17 }
 0x164   : > { %v1048_v41 = vunpack.c.l.b16 %v902_v18  ;;  %v1070_v42 = vunpack.c.l.b16 %v904_v23 }
 0x166   : > { %v1049_v43 = vpack.c.b16 %v1048_v41, %v1047_v36  ;;  %v1071_v44 = vpack.c.b16 %v1070_v42, %v1069_v40 }
 0x168   : > { %v1051_v25 = vsel %vm717_vm2, %v1049_v43, 0  ;;  %v1073_v26 = vsel %vm717_vm2, %v1071_v44, 0 }
 0x169   : > { %1060 = vmatpush.bf16.msrb.mxu2 %v1051_v25  ;;  %1082 = vmatpush.bf16.msrb.mxu3 %v1073_v26 }
 0x16c   : > { %1280 = vmatmul.msk.bf16.vlgmr.msrb.gmra.mxu2 %vm713_vm3, %v1292_v34  ;;  %1281 = vmatmul.msk.bf16.vlgmr.msrb.gmra.mxu3 %vm713_vm3, %v1292_v34 }
 0x1cc   : > { %v930_v45 = vpop.f32.mrf.mxu0  ;;  %v952_v46 = vpop.f32.mrf.mxu1 }
 0x1cd   : > { %v1089_v24 = vmax.f32 %v651_v51, %v930_v45  ;;  %v1091_v33 = vmax.f32 %v653_v52, %v952_v46 }
 0x1cf   : > { %1106 = vst.msk [vmem:[%s1714_s23] sm:$0xff] %vm1105_vm4, %v1089_v24 }
 0x1d0   : > { %1108 = vst.msk [vmem:[%s1714_s23 + $0x10] sm:$0xff] %vm1105_vm4, %v1091_v33 }
 0x1d4   : > { %v932_v34 = vpop.f32.mrf.mxu0  ;;  %v954_v47 = vpop.f32.mrf.mxu1 }
 0x1d5   : > { %v1090_v48 = vmax.f32 %v652_v57, %v932_v34  ;;  %v1092_v49 = vmax.f32 %v654_v58, %v954_v47 }
 0x1d7   : > { %1107 = vst.msk [vmem:[%s1714_s23 + $0x8] sm:$0xff] %vm1105_vm4, %v1090_v48 }
 0x1d8   : > { %1109 = vst.msk [vmem:[%s1714_s23 + $0x18] sm:$0xff] %vm1105_vm4, %v1092_v49 }
 0x1dd   : > { %v1018_v50 = vpop.f32.mrf.mxu0  ;;  %v1040_v51 = vpop.f32.mrf.mxu1 }
 0x1de   : > { %v1097_v52 = vmax.f32 %v659_v5, %v1018_v50  ;;  %v1099_v53 = vmax.f32 %v661_v6, %v1040_v51  ;;  %v1838_v6 = vmax.f32 %v1634_v8, %v1638_v10  ;;  %v1840_v8 = vmax.f32 %v1662_v20, %v1666_v22 }
 0x1df   : > { %v974_v55 = vpop.f32.mrf.mxu2  ;;  %v996_v57 = vpop.f32.mrf.mxu3  ;;  %v1842_v20 = vmax.f32 %v1676_v28, %v1680_v32 }
 0x1e0   : > { %1114 = vst.msk [vmem:[%s1714_s23 + $0x40] sm:$0xff] %vm1105_vm4, %v1097_v52  ;;  %v1093_v54 = vmax.f32 %v655_v63, %v974_v55  ;;  %v1095_v58 = vmax.f32 %v1834_v56, %v996_v57 }
 0x1e1   : > { %1116 = vst.msk [vmem:[%s1714_s23 + $0x50] sm:$0xff] %vm1105_vm4, %v1099_v53 }
 0x1e2   : > { %1110 = vst.msk [vmem:[%s1714_s23 + $0x20] sm:$0xff] %vm1105_vm4, %v1093_v54 }
 0x1e3   : > { %1112 = vst.msk [vmem:[%s1714_s23 + $0x30] sm:$0xff] %vm1105_vm4, %v1095_v58 }
 0x1e5   : > { %v1020_v1 = vpop.f32.mrf.mxu0  ;;  %v1042_v2 = vpop.f32.mrf.mxu1 }
 0x1e6   : > { %v1098_v59 = vmax.f32 %v1835_v3, %v1020_v1  ;;  %v1100_v60 = vmax.f32 %v1836_v61, %v1042_v2 }
 0x1e7   : > { %v976_v62 = vpop.f32.mrf.mxu2  ;;  %v998_v63 = vpop.f32.mrf.mxu3 }
 0x1e8   : > { %1115 = vst.msk [vmem:[%s1714_s23 + $0x48] sm:$0xff] %vm1105_vm4, %v1098_v59  ;;  %v1094_v5 = vmax.f32 %v1837_v4, %v976_v62  ;;  %v1096_v13 = vmax.f32 %v1838_v6, %v998_v63 }
 0x1e9   : > { %1117 = vst.msk [vmem:[%s1714_s23 + $0x58] sm:$0xff] %vm1105_vm4, %v1100_v60 }
 0x1ea   : > { %1111 = vst.msk [vmem:[%s1714_s23 + $0x28] sm:$0xff] %vm1105_vm4, %v1094_v5 }
 0x1eb   : > { %1113 = vst.msk [vmem:[%s1714_s23 + $0x38] sm:$0xff] %vm1105_vm4, %v1096_v13 }
 0x1ef   : > { %v1062_v14 = vpop.f32.mrf.mxu2  ;;  %v1084_v15 = vpop.f32.mrf.mxu3 }
 0x1f0   : > { %v1101_v7 = vmax.f32 %v1839_v16, %v1062_v14  ;;  %v1103_v9 = vmax.f32 %v1840_v8, %v1084_v15 }
 0x1f2   : > { %1118 = vst.msk [vmem:[%s1714_s23 + $0x60] sm:$0xff] %vm1105_vm4, %v1101_v7 }
 0x1f3   : > { %1120 = vst.msk [vmem:[%s1714_s23 + $0x70] sm:$0xff] %vm1105_vm4, %v1103_v9 }
 0x1f7   : > { %v1064_v10 = vpop.f32.mrf.mxu2  ;;  %v1086_v37 = vpop.f32.mrf.mxu3 }
 0x1f8   : > { %v1102_v21 = vmax.f32 %v1841_v19, %v1064_v10  ;;  %v1104_v22 = vmax.f32 %v1842_v20, %v1086_v37 }
 0x1fa   : > { %1119 = vst.msk [vmem:[%s1714_s23 + $0x68] sm:$0xff] %vm1105_vm4, %v1102_v21 }
 0x1fb   : > { %1121 = vst.msk [vmem:[%s1714_s23 + $0x78] sm:$0xff] %vm1105_vm4, %v1104_v22 }
 0x1fc   : > { %1363 = shalt.err (!%p1360_p3)
}
 0x1fd   : > { %s1400_s21 = smov 128   ;;  %s1401_s23 = smov 8  }
 0x1fe   : > { %1295 = dma.vmem_to_hbm [thread:$0]  (%p1480_p5), %s1137_s14, 2048, %s1139_s28, %s1123_s16, %s1400_s21, %s1400_s21, %s1401_s23  }
 0x1ff PF: > { %p1301_p4 = scmp.ge.s32.totalorder %s1398_s27, 2  ;;  %s1153_s8 = sand.u32 1, %s1386_s24  }
 0x200   : > { %s1154_s9 = scalar_lea.sflag [#allocation3], %s1153_s8 }
 0x201   : > { %p1298_p7 = pnand %p1301_p4, %p1484_p6 }
 0x203   : > { %p1299_p8 = pneg %p1298_p7 }
 0x205   : > { %1381 = dma.done.wait (%p1299_p8), %s1154_s9, 2048  }
 0x206   : > { %1383 = vsyncadd (%p1299_p8), %s1154_s9, 4294965248  ;;  %p17_p9 = scmp.ge.s32.totalorder %s1467_s30, 4   ;;  %s1843_s24 = smov %s1390_s25 }
 0x207   : > { %s1844_s25 = smov %s1394_s26  ;;  %s1845_s26 = smov %s1478_s10 }
 0x208   : > { %s1846_s27 = smov %s1467_s30  ;;  %19 = sbr.rel (!%p17_p9) target bundleno = 3 (0x3), region = 89 }
 0x20d   :  { %1160 = vsyncpa [#allocation3], 1 }
 0x20e   :  { %1162 = vsyncpa [#allocation3 + $0x1], 1 }

</bundles_post_ra>
